<compile_context>
chip_gen: v5e
topology: v5e:2x2
jax: 0.10.0
libtpu: 0.0.40
codegen_flags: <defaults>
</compile_context>

<pallas_src>
import jax
import jax.numpy as jnp
from jax.experimental import pallas as pl
from jax.experimental.pallas import tpu as pltpu


# ----------------------------------------------------------------------------
# Pallas kernels (one fused kernel per mode)
# ----------------------------------------------------------------------------
def fadein_down_kernel(xb_ref, w1_ref, b1_ref, wd_ref, b3_ref, o_ref):
    """Fused: (1-a)*[avg_pool(4,2,1) -> 1x1 conv]  +  a*[3x3 conv(pad 1) -> avg_pool(2,2)].

    xb_ref: (1, 2, 2, Ho+1, Wo+1, Cin)  parity-major blocked zero-padded input:
            xb[0, pa, pb, u, v, :] == x_pad[2u+pa, 2v+pb, :]
    w1_ref: (Cin, Cout)   1x1 conv weights, pre-scaled by (1-alpha)/16
    b1_ref: (1, Cout)     pre-scaled by (1-alpha)
    wd_ref: (2, 2, 2, 2, Cin, Cout)  3x3 weights with the trailing 2x2 avg-pool folded in,
            indexed [rh, pa, cw, pb, ci, co], pre-scaled by alpha/4
    b3_ref: (1, Cout)     pre-scaled by alpha
    o_ref : (1, Ho, Wo, Cout)
    """
    _, Ho, Wo, Cout = o_ref.shape
    Cin = xb_ref.shape[-1]

    # ---- previous branch: avg_pool(4,2,1) as parity shifted-adds (VPU), then 1x1 matmul.
    coarse = (xb_ref[0, 0, 0] + xb_ref[0, 0, 1] +
              xb_ref[0, 1, 0] + xb_ref[0, 1, 1])              # (Ho+1, Wo+1, Cin) 2x2 sums
    sum16 = (coarse[:Ho, :Wo] + coarse[1:, :Wo] +
             coarse[:Ho, 1:] + coarse[1:, 1:])                # (Ho, Wo, Cin) 4x4/stride2 sums
    prev = jnp.dot(sum16.reshape(Ho * Wo, Cin), w1_ref[...],
                   preferred_element_type=jnp.float32) + b1_ref[...]

    # ---- next branch: conv3x3 + 2x2 avg-pool folded into 16 low-res taps.
    acc = jnp.zeros((Ho * Wo, Cout), jnp.float32)
    for rh in range(2):
        for cw in range(2):
            for pa in range(2):
                for pb in range(2):
                    xs = xb_ref[0, pa, pb, rh:rh + Ho, cw:cw + Wo, :]     # (Ho, Wo, Cin)
                    acc = acc + jnp.dot(xs.reshape(Ho * Wo, Cin),
                                        wd_ref[rh, pa, cw, pb],
                                        preferred_element_type=jnp.float32)
    nxt = acc + b3_ref[...]

    # alpha blend is already folded into the weights -> just add and store.
    o_ref[0] = (prev + nxt).reshape(Ho, Wo, Cout).astype(o_ref.dtype)


def fadein_up_kernel(xp_ref, w1_ref, b1_ref, wu_ref, b3_ref, o_ref):
    """Fused: (1-a)*upsample_x2(1x1 conv)  +  a*[3x3 conv(pad 1) of nearest-x2 upsample].

    xp_ref: (1, H+2, W+2, Cin)  zero-padded NHWC input
    w1_ref: (Cin, Cout) pre-scaled by (1-alpha);  b1_ref: (1, Cout) pre-scaled by (1-alpha)
    wu_ref: (2, 2, 3, 3, Cin, Cout)  3x3 weights with the nearest-x2 upsample folded in
            (sub-pixel decomposition), indexed [p, q, rh, cw, ci, co], pre-scaled by alpha
    b3_ref: (1, Cout) pre-scaled by alpha
    o_ref : (1, 2, 2, H, W, Cout)  parity-major: o[0, p, q, i, j] == result[2i+p, 2j+q]
    """
    _, _, _, H, W, Cout = o_ref.shape
    Cin = xp_ref.shape[-1]

    # ---- previous branch: 1x1 conv on x; nearest-x2 upsample == same value at all parities.
    x = xp_ref[0, 1:H + 1, 1:W + 1, :]                                      # interior
    prev = jnp.dot(x.reshape(H * W, Cin), w1_ref[...],
                   preferred_element_type=jnp.float32) + b1_ref[...]        # (H*W, Cout)

    # ---- next branch: per output parity the conv on the upsampled image collapses to
    # <=4 taps on the LOW-RES padded input with parity-folded weights (16 taps total).
    used_by = {0: (0,), 1: (0, 1), 2: (1,)}     # tap offset -> output parities that read it
    acc = {(p, q): jnp.zeros((H * W, Cout), jnp.float32)
           for p in (0, 1) for q in (0, 1)}
    for rh in range(3):
        for cw in range(3):
            xs = xp_ref[0, rh:rh + H, cw:cw + W, :].reshape(H * W, Cin)
            for p in used_by[rh]:
                for q in used_by[cw]:
                    acc[(p, q)] = acc[(p, q)] + jnp.dot(
                        xs, wu_ref[p, q, rh, cw], preferred_element_type=jnp.float32)

    for p in (0, 1):
        for q in (0, 1):
            out = prev + acc[(p, q)] + b3_ref[...]
            o_ref[0, p, q] = out.reshape(H, W, Cout).astype(o_ref.dtype)


# ----------------------------------------------------------------------------
# Forward wrapper (layout / weight-folding glue only)
# ----------------------------------------------------------------------------
def fadein_concat_forward(x_nchw, params, alpha, downsample):
    Wp, bp, Wn, bn = params
    N, Cin, H, W = x_nchw.shape
    Cout = Wp.shape[0]
    alpha = jnp.float32(alpha)
    one_m_a = 1.0 - alpha

    w1 = jnp.transpose(Wp[:, :, 0, 0], (1, 0)).astype(jnp.float32)   # (Cin, Cout)
    b1 = bp.reshape(1, Cout).astype(jnp.float32)
    w3 = jnp.transpose(Wn, (2, 3, 1, 0)).astype(jnp.float32)         # (3, 3, Cin, Cout) HWIO
    b3 = bn.reshape(1, Cout).astype(jnp.float32)

    x_nhwc = jnp.transpose(x_nchw, (0, 2, 3, 1))
    xp = jnp.pad(x_nhwc, ((0, 0), (1, 1), (1, 1), (0, 0)))            # (N, H+2, W+2, Cin)

    if downsample:
        assert H % 2 == 0 and W % 2 == 0
        Ho, Wo = H // 2, W // 2
        # Parity-major blocked view of the padded input: xb[n,pa,pb,u,v,c] = xp[n,2u+pa,2v+pb,c]
        xb = xp.reshape(N, Ho + 1, 2, Wo + 1, 2, Cin).transpose(0, 2, 4, 1, 3, 5)

        # Fold the trailing 2x2 avg-pool into the 3x3 weights.
        # B[rh, pa, di] = 1  iff  exists p in {0,1}: p + di == 2*rh + pa
        B = jnp.array([[[1, 0, 0], [1, 1, 0]],
                       [[0, 1, 1], [0, 0, 1]]], jnp.float32)
        wd = 0.25 * jnp.einsum('rad,cbe,deio->racbio', B, B, w3)      # (2,2,2,2,Cin,Cout)

        # Fold alpha blend and the avg_pool(4,2,1) 1/16 factor into the (tiny) weights.
        w1s = w1 * (one_m_a / 16.0)
        b1s = b1 * one_m_a
        wds = wd * alpha
        b3s = b3 * alpha

        out = pl.pallas_call(
            fadein_down_kernel,
            out_shape=jax.ShapeDtypeStruct((N, Ho, Wo, Cout), x_nchw.dtype),
            grid=(N,),
            in_specs=[
                pl.BlockSpec((1, 2, 2, Ho + 1, Wo + 1, Cin),
                             lambda n: (n, 0, 0, 0, 0, 0)),
                pl.BlockSpec((Cin, Cout), lambda n: (0, 0)),
                pl.BlockSpec((1, Cout), lambda n: (0, 0)),
                pl.BlockSpec((2, 2, 2, 2, Cin, Cout),
                             lambda n: (0, 0, 0, 0, 0, 0)),
                pl.BlockSpec((1, Cout), lambda n: (0, 0)),
            ],
            out_specs=pl.BlockSpec((1, Ho, Wo, Cout), lambda n: (n, 0, 0, 0)),
            compiler_params=pltpu.CompilerParams(dimension_semantics=("parallel",)),
        )(xb, w1s, b1s, wds, b3s)
        return jnp.transpose(out, (0, 3, 1, 2))                       # NCHW
    else:
        # Fold the nearest-x2 upsample (sub-pixel decomposition) into the 3x3 weights.
        # A[p, rh, di] = 1 iff (p + di + 1) // 2 == rh
        A = jnp.array([[[1, 0, 0], [0, 1, 1], [0, 0, 0]],
                       [[0, 0, 0], [1, 1, 0], [0, 0, 1]]], jnp.float32)
        wu = jnp.einsum('prd,qce,deio->pqrcio', A, A, w3)             # (2,2,3,3,Cin,Cout)

        w1s = w1 * one_m_a
        b1s = b1 * one_m_a
        wus = wu * alpha
        b3s = b3 * alpha

        out = pl.pallas_call(
            fadein_up_kernel,
            out_shape=jax.ShapeDtypeStruct((N, 2, 2, H, W, Cout), x_nchw.dtype),
            grid=(N,),
            in_specs=[
                pl.BlockSpec((1, H + 2, W + 2, Cin), lambda n: (n, 0, 0, 0)),
                pl.BlockSpec((Cin, Cout), lambda n: (0, 0)),
                pl.BlockSpec((1, Cout), lambda n: (0, 0)),
                pl.BlockSpec((2, 2, 3, 3, Cin, Cout),
                             lambda n: (0, 0, 0, 0, 0, 0)),
                pl.BlockSpec((1, Cout), lambda n: (0, 0)),
            ],
            out_specs=pl.BlockSpec((1, 2, 2, H, W, Cout),
                                   lambda n: (n, 0, 0, 0, 0, 0)),
            compiler_params=pltpu.CompilerParams(dimension_semantics=("parallel",)),
        )(xp, w1s, b1s, wus, b3s)
        # (N, p, q, i, j, c) -> (N, c, 2i+p, 2j+q)
        return out.transpose(0, 5, 3, 1, 4, 2).reshape(N, Cout, 2 * H, 2 * W)


# ----------------------------------------------------------------------------
# Pure-JAX reference (independent code path) for a smoke check
# ----------------------------------------------------------------------------
def _avg_pool2d_ref(x, k, s, p):
    N, C, H, W = x.shape
    xpd = jnp.pad(x, ((0, 0), (0, 0), (p, p), (p, p)))
    Ho = (H + 2 * p - k) // s + 1
    Wo = (W + 2 * p - k) // s + 1
    out = jnp.zeros((N, C, Ho, Wo), x.dtype)
    for di in range(k):
        for dj in range(k):
            out = out + xpd[:, :, di:di + Ho * s:s, dj:dj + Wo * s:s]
    return out / float(k * k)


def _conv2d_ref(x, w, b, padding):
    xpd = jnp.pad(x, ((0, 0), (0, 0), (padding, padding), (padding, padding)))
    Cout, Cin, kh, kw = w.shape
    N, _, Hp, Wp_ = xpd.shape
    Ho, Wo = Hp - kh + 1, Wp_ - kw + 1
    out = jnp.zeros((N, Cout, Ho, Wo), jnp.float32)
    for di in range(kh):
        for dj in range(kw):
            out = out + jnp.einsum('nchw,dc->ndhw',
                                   xpd[:, :, di:di + Ho, dj:dj + Wo], w[:, :, di, dj])
    return out + b[None, :, None, None]


def _upsample_nearest_ref(x):
    return jnp.repeat(jnp.repeat(x, 2, axis=2), 2, axis=3)


def reference_forward(x, params, alpha, downsample):
    Wp, bp, Wn, bn = params
    if downsample:
        prev = _conv2d_ref(_avg_pool2d_ref(x, 4, 2, 1), Wp, bp, 0)
        nxt = _avg_pool2d_ref(_conv2d_ref(x, Wn, bn, 1), 2, 2, 0)
    else:
        prev = _upsample_nearest_ref(_conv2d_ref(x, Wp, bp, 0))
        nxt = _conv2d_ref(_upsample_nearest_ref(x), Wn, bn, 1)
    return prev * (1.0 - alpha) + nxt * alpha


# ----------------------------------------------------------------------------
if __name__ == "__main__":
    key = jax.random.PRNGKey(0)
    k1, k2, k3, k4, k5 = jax.random.split(key, 5)

    N, Cin, H, W = 2, 4, 16, 16
    Cout = 8

    x = jax.random.normal(k1, (N, Cin, H, W), jnp.float32)
    Wp = jax.random.normal(k2, (Cout, Cin, 1, 1), jnp.float32) * 0.2   # previous_model 1x1 conv
    bp = jax.random.normal(k3, (Cout,), jnp.float32) * 0.1
    Wn = jax.random.normal(k4, (Cout, Cin, 3, 3), jnp.float32) * 0.2   # next_model 3x3 conv
    bn = jax.random.normal(k5, (Cout,), jnp.float32) * 0.1
    params = (Wp, bp, Wn, bn)

    alpha = 0.3   # as if update_alpha(0.3) was called after __init__ (alpha starts at 0.0)

    fwd = jax.jit(fadein_concat_forward, static_argnames=("downsample",))
    out_down = fwd(x, params, alpha, downsample=True)     # (2, 8, 8, 8)
    out_up = fwd(x, params, alpha, downsample=False)      # (2, 8, 32, 32)
    jax.block_until_ready((out_down, out_up))

    ref_down = reference_forward(x, params, alpha, True)
    ref_up = reference_forward(x, params, alpha, False)

    assert out_down.shape == (N, Cout, H // 2, W // 2)
    assert out_up.shape == (N, Cout, 2 * H, 2 * W)
    # Tolerance covers default-precision f32 MXU passes (kernel vs XLA einsum) and the
    # reassociation introduced by folding the pool/upsample/alpha factors into the weights.
    assert jnp.allclose(out_down, ref_down, atol=2e-2, rtol=2e-2), \
        f"downsample mismatch: {jnp.max(jnp.abs(out_down - ref_down))}"
    assert jnp.allclose(out_up, ref_up, atol=2e-2, rtol=2e-2), \
        f"upsample mismatch: {jnp.max(jnp.abs(out_up - ref_up))}"

    print("KERNEL_OK")
</pallas_src>

<mosaic_0001>
module attributes {stable_mosaic.version = 11 : i64} {
  func.func @fadein_down_kernel(%arg0: i32, %arg1: memref<1x2x2x9x9x4xf32, #tpu.memory_space<vmem>>, %arg2: memref<4x8xf32, #tpu.memory_space<vmem>>, %arg3: memref<1x8xf32, #tpu.memory_space<vmem>>, %arg4: memref<2x2x2x2x4x8xf32, #tpu.memory_space<vmem>>, %arg5: memref<1x8xf32, #tpu.memory_space<vmem>>, %arg6: memref<1x8x8x8xf32, #tpu.memory_space<vmem>>) attributes {dimension_semantics = [#tpu.dimension_semantics<parallel>], iteration_bounds = array<i64: 2>, scalar_prefetch = 0 : i64, scratch_operands = 0 : i64, tpu.core_type = #tpu.core_type<tc>, window_params = [{transform_indices = @transform_0, window_bounds = array<i64: 1, 2, 2, 9, 9, 4>}, {pipeline_mode = #tpu.pipeline_mode<synchronous>, transform_indices = @transform_1, window_bounds = array<i64: 4, 8>}, {pipeline_mode = #tpu.pipeline_mode<synchronous>, transform_indices = @transform_2, window_bounds = array<i64: 1, 8>}, {pipeline_mode = #tpu.pipeline_mode<synchronous>, transform_indices = @transform_3, window_bounds = array<i64: 2, 2, 2, 2, 4, 8>}, {pipeline_mode = #tpu.pipeline_mode<synchronous>, transform_indices = @transform_4, window_bounds = array<i64: 1, 8>}, {transform_indices = @transform_5, window_bounds = array<i64: 1, 8, 8, 8>}]} {
    %c0 = arith.constant 0 : index
    %c0_0 = arith.constant 0 : index
    %c0_1 = arith.constant 0 : index
    %c0_2 = arith.constant 0 : index
    %c0_3 = arith.constant 0 : index
    %c0_4 = arith.constant 0 : index
    %0 = vector.load %arg1[%c0, %c0_0, %c0_1, %c0_2, %c0_3, %c0_4] : memref<1x2x2x9x9x4xf32, #tpu.memory_space<vmem>>, vector<1x1x1x9x9x4xf32>
    %1 = vector.shape_cast %0 : vector<1x1x1x9x9x4xf32> to vector<9x9x4xf32>
    %c0_5 = arith.constant 0 : index
    %c0_6 = arith.constant 0 : index
    %c1 = arith.constant 1 : index
    %c0_7 = arith.constant 0 : index
    %c0_8 = arith.constant 0 : index
    %c0_9 = arith.constant 0 : index
    %2 = vector.load %arg1[%c0_5, %c0_6, %c1, %c0_7, %c0_8, %c0_9] : memref<1x2x2x9x9x4xf32, #tpu.memory_space<vmem>>, vector<1x1x1x9x9x4xf32>
    %3 = vector.shape_cast %2 : vector<1x1x1x9x9x4xf32> to vector<9x9x4xf32>
    %4 = arith.addf %1, %3 : vector<9x9x4xf32>
    %c0_10 = arith.constant 0 : index
    %c1_11 = arith.constant 1 : index
    %c0_12 = arith.constant 0 : index
    %c0_13 = arith.constant 0 : index
    %c0_14 = arith.constant 0 : index
    %c0_15 = arith.constant 0 : index
    %5 = vector.load %arg1[%c0_10, %c1_11, %c0_12, %c0_13, %c0_14, %c0_15] : memref<1x2x2x9x9x4xf32, #tpu.memory_space<vmem>>, vector<1x1x1x9x9x4xf32>
    %6 = vector.shape_cast %5 : vector<1x1x1x9x9x4xf32> to vector<9x9x4xf32>
    %7 = arith.addf %4, %6 : vector<9x9x4xf32>
    %c0_16 = arith.constant 0 : index
    %c1_17 = arith.constant 1 : index
    %c1_18 = arith.constant 1 : index
    %c0_19 = arith.constant 0 : index
    %c0_20 = arith.constant 0 : index
    %c0_21 = arith.constant 0 : index
    %8 = vector.load %arg1[%c0_16, %c1_17, %c1_18, %c0_19, %c0_20, %c0_21] : memref<1x2x2x9x9x4xf32, #tpu.memory_space<vmem>>, vector<1x1x1x9x9x4xf32>
    %9 = vector.shape_cast %8 : vector<1x1x1x9x9x4xf32> to vector<9x9x4xf32>
    %10 = arith.addf %7, %9 : vector<9x9x4xf32>
    %11 = vector.extract_strided_slice %10 {offsets = [0, 0, 0], sizes = [8, 8, 4], strides = [1, 1, 1]} : vector<9x9x4xf32> to vector<8x8x4xf32>
    %12 = vector.extract_strided_slice %10 {offsets = [1, 0, 0], sizes = [8, 8, 4], strides = [1, 1, 1]} : vector<9x9x4xf32> to vector<8x8x4xf32>
    %13 = arith.addf %11, %12 : vector<8x8x4xf32>
    %14 = vector.extract_strided_slice %10 {offsets = [0, 1, 0], sizes = [8, 8, 4], strides = [1, 1, 1]} : vector<9x9x4xf32> to vector<8x8x4xf32>
    %15 = arith.addf %13, %14 : vector<8x8x4xf32>
    %16 = vector.extract_strided_slice %10 {offsets = [1, 1, 0], sizes = [8, 8, 4], strides = [1, 1, 1]} : vector<9x9x4xf32> to vector<8x8x4xf32>
    %17 = arith.addf %15, %16 : vector<8x8x4xf32>
    %18 = vector.shape_cast %17 : vector<8x8x4xf32> to vector<64x4xf32>
    %c0_22 = arith.constant 0 : index
    %c0_23 = arith.constant 0 : index
    %19 = vector.load %arg2[%c0_22, %c0_23] : memref<4x8xf32, #tpu.memory_space<vmem>>, vector<4x8xf32>
    %cst = arith.constant dense<0.000000e+00> : vector<64x8xf32>
    %20 = tpu.matmul %18, %19, %cst {dimension_numbers = #tpu.dot_dimension_numbers<[1], [0], [0], [1], [0, 0, 1, 1], [], []>} : vector<64x4xf32>, vector<4x8xf32>, vector<64x8xf32> -> vector<64x8xf32>
    %c0_24 = arith.constant 0 : index
    %c0_25 = arith.constant 0 : index
    %21 = vector.load %arg3[%c0_24, %c0_25] : memref<1x8xf32, #tpu.memory_space<vmem>>, vector<1x8xf32>
    %22 = vector.broadcast %21 : vector<1x8xf32> to vector<64x8xf32>
    %23 = arith.addf %20, %22 : vector<64x8xf32>
    %cst_26 = arith.constant 0.000000e+00 : f32
    %24 = vector.broadcast %cst_26 : f32 to vector<64x8xf32>
    %c0_27 = arith.constant 0 : index
    %c0_28 = arith.constant 0 : index
    %c0_29 = arith.constant 0 : index
    %c0_30 = arith.constant 0 : index
    %c0_31 = arith.constant 0 : index
    %c0_32 = arith.constant 0 : index
    %25 = vector.load %arg1[%c0_27, %c0_28, %c0_29, %c0_30, %c0_31, %c0_32] : memref<1x2x2x9x9x4xf32, #tpu.memory_space<vmem>>, vector<1x1x1x8x8x4xf32>
    %26 = vector.shape_cast %25 : vector<1x1x1x8x8x4xf32> to vector<8x8x4xf32>
    %27 = vector.shape_cast %26 : vector<8x8x4xf32> to vector<64x4xf32>
    %c0_33 = arith.constant 0 : index
    %c0_34 = arith.constant 0 : index
    %c0_35 = arith.constant 0 : index
    %c0_36 = arith.constant 0 : index
    %c0_37 = arith.constant 0 : index
    %c0_38 = arith.constant 0 : index
    %28 = vector.load %arg4[%c0_33, %c0_34, %c0_35, %c0_36, %c0_37, %c0_38] : memref<2x2x2x2x4x8xf32, #tpu.memory_space<vmem>>, vector<1x1x1x1x4x8xf32>
    %29 = vector.shape_cast %28 : vector<1x1x1x1x4x8xf32> to vector<4x8xf32>
    %cst_39 = arith.constant dense<0.000000e+00> : vector<64x8xf32>
    %30 = tpu.matmul %27, %29, %cst_39 {dimension_numbers = #tpu.dot_dimension_numbers<[1], [0], [0], [1], [0, 0, 1, 1], [], []>} : vector<64x4xf32>, vector<4x8xf32>, vector<64x8xf32> -> vector<64x8xf32>
    %31 = arith.addf %24, %30 : vector<64x8xf32>
    %c0_40 = arith.constant 0 : index
    %c0_41 = arith.constant 0 : index
    %c1_42 = arith.constant 1 : index
    %c0_43 = arith.constant 0 : index
    %c0_44 = arith.constant 0 : index
    %c0_45 = arith.constant 0 : index
    %32 = vector.load %arg1[%c0_40, %c0_41, %c1_42, %c0_43, %c0_44, %c0_45] : memref<1x2x2x9x9x4xf32, #tpu.memory_space<vmem>>, vector<1x1x1x8x8x4xf32>
    %33 = vector.shape_cast %32 : vector<1x1x1x8x8x4xf32> to vector<8x8x4xf32>
    %34 = vector.shape_cast %33 : vector<8x8x4xf32> to vector<64x4xf32>
    %c0_46 = arith.constant 0 : index
    %c0_47 = arith.constant 0 : index
    %c0_48 = arith.constant 0 : index
    %c1_49 = arith.constant 1 : index
    %c0_50 = arith.constant 0 : index
    %c0_51 = arith.constant 0 : index
    %35 = vector.load %arg4[%c0_46, %c0_47, %c0_48, %c1_49, %c0_50, %c0_51] : memref<2x2x2x2x4x8xf32, #tpu.memory_space<vmem>>, vector<1x1x1x1x4x8xf32>
    %36 = vector.shape_cast %35 : vector<1x1x1x1x4x8xf32> to vector<4x8xf32>
    %cst_52 = arith.constant dense<0.000000e+00> : vector<64x8xf32>
    %37 = tpu.matmul %34, %36, %cst_52 {dimension_numbers = #tpu.dot_dimension_numbers<[1], [0], [0], [1], [0, 0, 1, 1], [], []>} : vector<64x4xf32>, vector<4x8xf32>, vector<64x8xf32> -> vector<64x8xf32>
    %38 = arith.addf %31, %37 : vector<64x8xf32>
    %c0_53 = arith.constant 0 : index
    %c1_54 = arith.constant 1 : index
    %c0_55 = arith.constant 0 : index
    %c0_56 = arith.constant 0 : index
    %c0_57 = arith.constant 0 : index
    %c0_58 = arith.constant 0 : index
    %39 = vector.load %arg1[%c0_53, %c1_54, %c0_55, %c0_56, %c0_57, %c0_58] : memref<1x2x2x9x9x4xf32, #tpu.memory_space<vmem>>, vector<1x1x1x8x8x4xf32>
    %40 = vector.shape_cast %39 : vector<1x1x1x8x8x4xf32> to vector<8x8x4xf32>
    %41 = vector.shape_cast %40 : vector<8x8x4xf32> to vector<64x4xf32>
    %c0_59 = arith.constant 0 : index
    %c1_60 = arith.constant 1 : index
    %c0_61 = arith.constant 0 : index
    %c0_62 = arith.constant 0 : index
    %c0_63 = arith.constant 0 : index
    %c0_64 = arith.constant 0 : index
    %42 = vector.load %arg4[%c0_59, %c1_60, %c0_61, %c0_62, %c0_63, %c0_64] : memref<2x2x2x2x4x8xf32, #tpu.memory_space<vmem>>, vector<1x1x1x1x4x8xf32>
    %43 = vector.shape_cast %42 : vector<1x1x1x1x4x8xf32> to vector<4x8xf32>
    %cst_65 = arith.constant dense<0.000000e+00> : vector<64x8xf32>
    %44 = tpu.matmul %41, %43, %cst_65 {dimension_numbers = #tpu.dot_dimension_numbers<[1], [0], [0], [1], [0, 0, 1, 1], [], []>} : vector<64x4xf32>, vector<4x8xf32>, vector<64x8xf32> -> vector<64x8xf32>
    %45 = arith.addf %38, %44 : vector<64x8xf32>
    %c0_66 = arith.constant 0 : index
    %c1_67 = arith.constant 1 : index
    %c1_68 = arith.constant 1 : index
    %c0_69 = arith.constant 0 : index
    %c0_70 = arith.constant 0 : index
    %c0_71 = arith.constant 0 : index
    %46 = vector.load %arg1[%c0_66, %c1_67, %c1_68, %c0_69, %c0_70, %c0_71] : memref<1x2x2x9x9x4xf32, #tpu.memory_space<vmem>>, vector<1x1x1x8x8x4xf32>
    %47 = vector.shape_cast %46 : vector<1x1x1x8x8x4xf32> to vector<8x8x4xf32>
    %48 = vector.shape_cast %47 : vector<8x8x4xf32> to vector<64x4xf32>
    %c0_72 = arith.constant 0 : index
    %c1_73 = arith.constant 1 : index
    %c0_74 = arith.constant 0 : index
    %c1_75 = arith.constant 1 : index
    %c0_76 = arith.constant 0 : index
    %c0_77 = arith.constant 0 : index
    %49 = vector.load %arg4[%c0_72, %c1_73, %c0_74, %c1_75, %c0_76, %c0_77] : memref<2x2x2x2x4x8xf32, #tpu.memory_space<vmem>>, vector<1x1x1x1x4x8xf32>
    %50 = vector.shape_cast %49 : vector<1x1x1x1x4x8xf32> to vector<4x8xf32>
    %cst_78 = arith.constant dense<0.000000e+00> : vector<64x8xf32>
    %51 = tpu.matmul %48, %50, %cst_78 {dimension_numbers = #tpu.dot_dimension_numbers<[1], [0], [0], [1], [0, 0, 1, 1], [], []>} : vector<64x4xf32>, vector<4x8xf32>, vector<64x8xf32> -> vector<64x8xf32>
    %52 = arith.addf %45, %51 : vector<64x8xf32>
    %c0_79 = arith.constant 0 : index
    %c0_80 = arith.constant 0 : index
    %c0_81 = arith.constant 0 : index
    %c0_82 = arith.constant 0 : index
    %c1_83 = arith.constant 1 : index
    %c0_84 = arith.constant 0 : index
    %53 = vector.load %arg1[%c0_79, %c0_80, %c0_81, %c0_82, %c1_83, %c0_84] : memref<1x2x2x9x9x4xf32, #tpu.memory_space<vmem>>, vector<1x1x1x8x8x4xf32>
    %54 = vector.shape_cast %53 : vector<1x1x1x8x8x4xf32> to vector<8x8x4xf32>
    %55 = vector.shape_cast %54 : vector<8x8x4xf32> to vector<64x4xf32>
    %c0_85 = arith.constant 0 : index
    %c0_86 = arith.constant 0 : index
    %c1_87 = arith.constant 1 : index
    %c0_88 = arith.constant 0 : index
    %c0_89 = arith.constant 0 : index
    %c0_90 = arith.constant 0 : index
    %56 = vector.load %arg4[%c0_85, %c0_86, %c1_87, %c0_88, %c0_89, %c0_90] : memref<2x2x2x2x4x8xf32, #tpu.memory_space<vmem>>, vector<1x1x1x1x4x8xf32>
    %57 = vector.shape_cast %56 : vector<1x1x1x1x4x8xf32> to vector<4x8xf32>
    %cst_91 = arith.constant dense<0.000000e+00> : vector<64x8xf32>
    %58 = tpu.matmul %55, %57, %cst_91 {dimension_numbers = #tpu.dot_dimension_numbers<[1], [0], [0], [1], [0, 0, 1, 1], [], []>} : vector<64x4xf32>, vector<4x8xf32>, vector<64x8xf32> -> vector<64x8xf32>
    %59 = arith.addf %52, %58 : vector<64x8xf32>
    %c0_92 = arith.constant 0 : index
    %c0_93 = arith.constant 0 : index
    %c1_94 = arith.constant 1 : index
    %c0_95 = arith.constant 0 : index
    %c1_96 = arith.constant 1 : index
    %c0_97 = arith.constant 0 : index
    %60 = vector.load %arg1[%c0_92, %c0_93, %c1_94, %c0_95, %c1_96, %c0_97] : memref<1x2x2x9x9x4xf32, #tpu.memory_space<vmem>>, vector<1x1x1x8x8x4xf32>
    %61 = vector.shape_cast %60 : vector<1x1x1x8x8x4xf32> to vector<8x8x4xf32>
    %62 = vector.shape_cast %61 : vector<8x8x4xf32> to vector<64x4xf32>
    %c0_98 = arith.constant 0 : index
    %c0_99 = arith.constant 0 : index
    %c1_100 = arith.constant 1 : index
    %c1_101 = arith.constant 1 : index
    %c0_102 = arith.constant 0 : index
    %c0_103 = arith.constant 0 : index
    %63 = vector.load %arg4[%c0_98, %c0_99, %c1_100, %c1_101, %c0_102, %c0_103] : memref<2x2x2x2x4x8xf32, #tpu.memory_space<vmem>>, vector<1x1x1x1x4x8xf32>
    %64 = vector.shape_cast %63 : vector<1x1x1x1x4x8xf32> to vector<4x8xf32>
    %cst_104 = arith.constant dense<0.000000e+00> : vector<64x8xf32>
    %65 = tpu.matmul %62, %64, %cst_104 {dimension_numbers = #tpu.dot_dimension_numbers<[1], [0], [0], [1], [0, 0, 1, 1], [], []>} : vector<64x4xf32>, vector<4x8xf32>, vector<64x8xf32> -> vector<64x8xf32>
    %66 = arith.addf %59, %65 : vector<64x8xf32>
    %c0_105 = arith.constant 0 : index
    %c1_106 = arith.constant 1 : index
    %c0_107 = arith.constant 0 : index
    %c0_108 = arith.constant 0 : index
    %c1_109 = arith.constant 1 : index
    %c0_110 = arith.constant 0 : index
    %67 = vector.load %arg1[%c0_105, %c1_106, %c0_107, %c0_108, %c1_109, %c0_110] : memref<1x2x2x9x9x4xf32, #tpu.memory_space<vmem>>, vector<1x1x1x8x8x4xf32>
    %68 = vector.shape_cast %67 : vector<1x1x1x8x8x4xf32> to vector<8x8x4xf32>
    %69 = vector.shape_cast %68 : vector<8x8x4xf32> to vector<64x4xf32>
    %c0_111 = arith.constant 0 : index
    %c1_112 = arith.constant 1 : index
    %c1_113 = arith.constant 1 : index
    %c0_114 = arith.constant 0 : index
    %c0_115 = arith.constant 0 : index
    %c0_116 = arith.constant 0 : index
    %70 = vector.load %arg4[%c0_111, %c1_112, %c1_113, %c0_114, %c0_115, %c0_116] : memref<2x2x2x2x4x8xf32, #tpu.memory_space<vmem>>, vector<1x1x1x1x4x8xf32>
    %71 = vector.shape_cast %70 : vector<1x1x1x1x4x8xf32> to vector<4x8xf32>
    %cst_117 = arith.constant dense<0.000000e+00> : vector<64x8xf32>
    %72 = tpu.matmul %69, %71, %cst_117 {dimension_numbers = #tpu.dot_dimension_numbers<[1], [0], [0], [1], [0, 0, 1, 1], [], []>} : vector<64x4xf32>, vector<4x8xf32>, vector<64x8xf32> -> vector<64x8xf32>
    %73 = arith.addf %66, %72 : vector<64x8xf32>
    %c0_118 = arith.constant 0 : index
    %c1_119 = arith.constant 1 : index
    %c1_120 = arith.constant 1 : index
    %c0_121 = arith.constant 0 : index
    %c1_122 = arith.constant 1 : index
    %c0_123 = arith.constant 0 : index
    %74 = vector.load %arg1[%c0_118, %c1_119, %c1_120, %c0_121, %c1_122, %c0_123] : memref<1x2x2x9x9x4xf32, #tpu.memory_space<vmem>>, vector<1x1x1x8x8x4xf32>
    %75 = vector.shape_cast %74 : vector<1x1x1x8x8x4xf32> to vector<8x8x4xf32>
    %76 = vector.shape_cast %75 : vector<8x8x4xf32> to vector<64x4xf32>
    %c0_124 = arith.constant 0 : index
    %c1_125 = arith.constant 1 : index
    %c1_126 = arith.constant 1 : index
    %c1_127 = arith.constant 1 : index
    %c0_128 = arith.constant 0 : index
    %c0_129 = arith.constant 0 : index
    %77 = vector.load %arg4[%c0_124, %c1_125, %c1_126, %c1_127, %c0_128, %c0_129] : memref<2x2x2x2x4x8xf32, #tpu.memory_space<vmem>>, vector<1x1x1x1x4x8xf32>
    %78 = vector.shape_cast %77 : vector<1x1x1x1x4x8xf32> to vector<4x8xf32>
    %cst_130 = arith.constant dense<0.000000e+00> : vector<64x8xf32>
    %79 = tpu.matmul %76, %78, %cst_130 {dimension_numbers = #tpu.dot_dimension_numbers<[1], [0], [0], [1], [0, 0, 1, 1], [], []>} : vector<64x4xf32>, vector<4x8xf32>, vector<64x8xf32> -> vector<64x8xf32>
    %80 = arith.addf %73, %79 : vector<64x8xf32>
    %c0_131 = arith.constant 0 : index
    %c0_132 = arith.constant 0 : index
    %c0_133 = arith.constant 0 : index
    %c1_134 = arith.constant 1 : index
    %c0_135 = arith.constant 0 : index
    %c0_136 = arith.constant 0 : index
    %81 = vector.load %arg1[%c0_131, %c0_132, %c0_133, %c1_134, %c0_135, %c0_136] : memref<1x2x2x9x9x4xf32, #tpu.memory_space<vmem>>, vector<1x1x1x8x8x4xf32>
    %82 = vector.shape_cast %81 : vector<1x1x1x8x8x4xf32> to vector<8x8x4xf32>
    %83 = vector.shape_cast %82 : vector<8x8x4xf32> to vector<64x4xf32>
    %c1_137 = arith.constant 1 : index
    %c0_138 = arith.constant 0 : index
    %c0_139 = arith.constant 0 : index
    %c0_140 = arith.constant 0 : index
    %c0_141 = arith.constant 0 : index
    %c0_142 = arith.constant 0 : index
    %84 = vector.load %arg4[%c1_137, %c0_138, %c0_139, %c0_140, %c0_141, %c0_142] : memref<2x2x2x2x4x8xf32, #tpu.memory_space<vmem>>, vector<1x1x1x1x4x8xf32>
    %85 = vector.shape_cast %84 : vector<1x1x1x1x4x8xf32> to vector<4x8xf32>
    %cst_143 = arith.constant dense<0.000000e+00> : vector<64x8xf32>
    %86 = tpu.matmul %83, %85, %cst_143 {dimension_numbers = #tpu.dot_dimension_numbers<[1], [0], [0], [1], [0, 0, 1, 1], [], []>} : vector<64x4xf32>, vector<4x8xf32>, vector<64x8xf32> -> vector<64x8xf32>
    %87 = arith.addf %80, %86 : vector<64x8xf32>
    %c0_144 = arith.constant 0 : index
    %c0_145 = arith.constant 0 : index
    %c1_146 = arith.constant 1 : index
    %c1_147 = arith.constant 1 : index
    %c0_148 = arith.constant 0 : index
    %c0_149 = arith.constant 0 : index
    %88 = vector.load %arg1[%c0_144, %c0_145, %c1_146, %c1_147, %c0_148, %c0_149] : memref<1x2x2x9x9x4xf32, #tpu.memory_space<vmem>>, vector<1x1x1x8x8x4xf32>
    %89 = vector.shape_cast %88 : vector<1x1x1x8x8x4xf32> to vector<8x8x4xf32>
    %90 = vector.shape_cast %89 : vector<8x8x4xf32> to vector<64x4xf32>
    %c1_150 = arith.constant 1 : index
    %c0_151 = arith.constant 0 : index
    %c0_152 = arith.constant 0 : index
    %c1_153 = arith.constant 1 : index
    %c0_154 = arith.constant 0 : index
    %c0_155 = arith.constant 0 : index
    %91 = vector.load %arg4[%c1_150, %c0_151, %c0_152, %c1_153, %c0_154, %c0_155] : memref<2x2x2x2x4x8xf32, #tpu.memory_space<vmem>>, vector<1x1x1x1x4x8xf32>
    %92 = vector.shape_cast %91 : vector<1x1x1x1x4x8xf32> to vector<4x8xf32>
    %cst_156 = arith.constant dense<0.000000e+00> : vector<64x8xf32>
    %93 = tpu.matmul %90, %92, %cst_156 {dimension_numbers = #tpu.dot_dimension_numbers<[1], [0], [0], [1], [0, 0, 1, 1], [], []>} : vector<64x4xf32>, vector<4x8xf32>, vector<64x8xf32> -> vector<64x8xf32>
    %94 = arith.addf %87, %93 : vector<64x8xf32>
    %c0_157 = arith.constant 0 : index
    %c1_158 = arith.constant 1 : index
    %c0_159 = arith.constant 0 : index
    %c1_160 = arith.constant 1 : index
    %c0_161 = arith.constant 0 : index
    %c0_162 = arith.constant 0 : index
    %95 = vector.load %arg1[%c0_157, %c1_158, %c0_159, %c1_160, %c0_161, %c0_162] : memref<1x2x2x9x9x4xf32, #tpu.memory_space<vmem>>, vector<1x1x1x8x8x4xf32>
    %96 = vector.shape_cast %95 : vector<1x1x1x8x8x4xf32> to vector<8x8x4xf32>
    %97 = vector.shape_cast %96 : vector<8x8x4xf32> to vector<64x4xf32>
    %c1_163 = arith.constant 1 : index
    %c1_164 = arith.constant 1 : index
    %c0_165 = arith.constant 0 : index
    %c0_166 = arith.constant 0 : index
    %c0_167 = arith.constant 0 : index
    %c0_168 = arith.constant 0 : index
    %98 = vector.load %arg4[%c1_163, %c1_164, %c0_165, %c0_166, %c0_167, %c0_168] : memref<2x2x2x2x4x8xf32, #tpu.memory_space<vmem>>, vector<1x1x1x1x4x8xf32>
    %99 = vector.shape_cast %98 : vector<1x1x1x1x4x8xf32> to vector<4x8xf32>
    %cst_169 = arith.constant dense<0.000000e+00> : vector<64x8xf32>
    %100 = tpu.matmul %97, %99, %cst_169 {dimension_numbers = #tpu.dot_dimension_numbers<[1], [0], [0], [1], [0, 0, 1, 1], [], []>} : vector<64x4xf32>, vector<4x8xf32>, vector<64x8xf32> -> vector<64x8xf32>
    %101 = arith.addf %94, %100 : vector<64x8xf32>
    %c0_170 = arith.constant 0 : index
    %c1_171 = arith.constant 1 : index
    %c1_172 = arith.constant 1 : index
    %c1_173 = arith.constant 1 : index
    %c0_174 = arith.constant 0 : index
    %c0_175 = arith.constant 0 : index
    %102 = vector.load %arg1[%c0_170, %c1_171, %c1_172, %c1_173, %c0_174, %c0_175] : memref<1x2x2x9x9x4xf32, #tpu.memory_space<vmem>>, vector<1x1x1x8x8x4xf32>
    %103 = vector.shape_cast %102 : vector<1x1x1x8x8x4xf32> to vector<8x8x4xf32>
    %104 = vector.shape_cast %103 : vector<8x8x4xf32> to vector<64x4xf32>
    %c1_176 = arith.constant 1 : index
    %c1_177 = arith.constant 1 : index
    %c0_178 = arith.constant 0 : index
    %c1_179 = arith.constant 1 : index
    %c0_180 = arith.constant 0 : index
    %c0_181 = arith.constant 0 : index
    %105 = vector.load %arg4[%c1_176, %c1_177, %c0_178, %c1_179, %c0_180, %c0_181] : memref<2x2x2x2x4x8xf32, #tpu.memory_space<vmem>>, vector<1x1x1x1x4x8xf32>
    %106 = vector.shape_cast %105 : vector<1x1x1x1x4x8xf32> to vector<4x8xf32>
    %cst_182 = arith.constant dense<0.000000e+00> : vector<64x8xf32>
    %107 = tpu.matmul %104, %106, %cst_182 {dimension_numbers = #tpu.dot_dimension_numbers<[1], [0], [0], [1], [0, 0, 1, 1], [], []>} : vector<64x4xf32>, vector<4x8xf32>, vector<64x8xf32> -> vector<64x8xf32>
    %108 = arith.addf %101, %107 : vector<64x8xf32>
    %c0_183 = arith.constant 0 : index
    %c0_184 = arith.constant 0 : index
    %c0_185 = arith.constant 0 : index
    %c1_186 = arith.constant 1 : index
    %c1_187 = arith.constant 1 : index
    %c0_188 = arith.constant 0 : index
    %109 = vector.load %arg1[%c0_183, %c0_184, %c0_185, %c1_186, %c1_187, %c0_188] : memref<1x2x2x9x9x4xf32, #tpu.memory_space<vmem>>, vector<1x1x1x8x8x4xf32>
    %110 = vector.shape_cast %109 : vector<1x1x1x8x8x4xf32> to vector<8x8x4xf32>
    %111 = vector.shape_cast %110 : vector<8x8x4xf32> to vector<64x4xf32>
    %c1_189 = arith.constant 1 : index
    %c0_190 = arith.constant 0 : index
    %c1_191 = arith.constant 1 : index
    %c0_192 = arith.constant 0 : index
    %c0_193 = arith.constant 0 : index
    %c0_194 = arith.constant 0 : index
    %112 = vector.load %arg4[%c1_189, %c0_190, %c1_191, %c0_192, %c0_193, %c0_194] : memref<2x2x2x2x4x8xf32, #tpu.memory_space<vmem>>, vector<1x1x1x1x4x8xf32>
    %113 = vector.shape_cast %112 : vector<1x1x1x1x4x8xf32> to vector<4x8xf32>
    %cst_195 = arith.constant dense<0.000000e+00> : vector<64x8xf32>
    %114 = tpu.matmul %111, %113, %cst_195 {dimension_numbers = #tpu.dot_dimension_numbers<[1], [0], [0], [1], [0, 0, 1, 1], [], []>} : vector<64x4xf32>, vector<4x8xf32>, vector<64x8xf32> -> vector<64x8xf32>
    %115 = arith.addf %108, %114 : vector<64x8xf32>
    %c0_196 = arith.constant 0 : index
    %c0_197 = arith.constant 0 : index
    %c1_198 = arith.constant 1 : index
    %c1_199 = arith.constant 1 : index
    %c1_200 = arith.constant 1 : index
    %c0_201 = arith.constant 0 : index
    %116 = vector.load %arg1[%c0_196, %c0_197, %c1_198, %c1_199, %c1_200, %c0_201] : memref<1x2x2x9x9x4xf32, #tpu.memory_space<vmem>>, vector<1x1x1x8x8x4xf32>
    %117 = vector.shape_cast %116 : vector<1x1x1x8x8x4xf32> to vector<8x8x4xf32>
    %118 = vector.shape_cast %117 : vector<8x8x4xf32> to vector<64x4xf32>
    %c1_202 = arith.constant 1 : index
    %c0_203 = arith.constant 0 : index
    %c1_204 = arith.constant 1 : index
    %c1_205 = arith.constant 1 : index
    %c0_206 = arith.constant 0 : index
    %c0_207 = arith.constant 0 : index
    %119 = vector.load %arg4[%c1_202, %c0_203, %c1_204, %c1_205, %c0_206, %c0_207] : memref<2x2x2x2x4x8xf32, #tpu.memory_space<vmem>>, vector<1x1x1x1x4x8xf32>
    %120 = vector.shape_cast %119 : vector<1x1x1x1x4x8xf32> to vector<4x8xf32>
    %cst_208 = arith.constant dense<0.000000e+00> : vector<64x8xf32>
    %121 = tpu.matmul %118, %120, %cst_208 {dimension_numbers = #tpu.dot_dimension_numbers<[1], [0], [0], [1], [0, 0, 1, 1], [], []>} : vector<64x4xf32>, vector<4x8xf32>, vector<64x8xf32> -> vector<64x8xf32>
    %122 = arith.addf %115, %121 : vector<64x8xf32>
    %c0_209 = arith.constant 0 : index
    %c1_210 = arith.constant 1 : index
    %c0_211 = arith.constant 0 : index
    %c1_212 = arith.constant 1 : index
    %c1_213 = arith.constant 1 : index
    %c0_214 = arith.constant 0 : index
    %123 = vector.load %arg1[%c0_209, %c1_210, %c0_211, %c1_212, %c1_213, %c0_214] : memref<1x2x2x9x9x4xf32, #tpu.memory_space<vmem>>, vector<1x1x1x8x8x4xf32>
    %124 = vector.shape_cast %123 : vector<1x1x1x8x8x4xf32> to vector<8x8x4xf32>
    %125 = vector.shape_cast %124 : vector<8x8x4xf32> to vector<64x4xf32>
    %c1_215 = arith.constant 1 : index
    %c1_216 = arith.constant 1 : index
    %c1_217 = arith.constant 1 : index
    %c0_218 = arith.constant 0 : index
    %c0_219 = arith.constant 0 : index
    %c0_220 = arith.constant 0 : index
    %126 = vector.load %arg4[%c1_215, %c1_216, %c1_217, %c0_218, %c0_219, %c0_220] : memref<2x2x2x2x4x8xf32, #tpu.memory_space<vmem>>, vector<1x1x1x1x4x8xf32>
    %127 = vector.shape_cast %126 : vector<1x1x1x1x4x8xf32> to vector<4x8xf32>
    %cst_221 = arith.constant dense<0.000000e+00> : vector<64x8xf32>
    %128 = tpu.matmul %125, %127, %cst_221 {dimension_numbers = #tpu.dot_dimension_numbers<[1], [0], [0], [1], [0, 0, 1, 1], [], []>} : vector<64x4xf32>, vector<4x8xf32>, vector<64x8xf32> -> vector<64x8xf32>
    %129 = arith.addf %122, %128 : vector<64x8xf32>
    %c0_222 = arith.constant 0 : index
    %c1_223 = arith.constant 1 : index
    %c1_224 = arith.constant 1 : index
    %c1_225 = arith.constant 1 : index
    %c1_226 = arith.constant 1 : index
    %c0_227 = arith.constant 0 : index
    %130 = vector.load %arg1[%c0_222, %c1_223, %c1_224, %c1_225, %c1_226, %c0_227] : memref<1x2x2x9x9x4xf32, #tpu.memory_space<vmem>>, vector<1x1x1x8x8x4xf32>
    %131 = vector.shape_cast %130 : vector<1x1x1x8x8x4xf32> to vector<8x8x4xf32>
    %132 = vector.shape_cast %131 : vector<8x8x4xf32> to vector<64x4xf32>
    %c1_228 = arith.constant 1 : index
    %c1_229 = arith.constant 1 : index
    %c1_230 = arith.constant 1 : index
    %c1_231 = arith.constant 1 : index
    %c0_232 = arith.constant 0 : index
    %c0_233 = arith.constant 0 : index
    %133 = vector.load %arg4[%c1_228, %c1_229, %c1_230, %c1_231, %c0_232, %c0_233] : memref<2x2x2x2x4x8xf32, #tpu.memory_space<vmem>>, vector<1x1x1x1x4x8xf32>
    %134 = vector.shape_cast %133 : vector<1x1x1x1x4x8xf32> to vector<4x8xf32>
    %cst_234 = arith.constant dense<0.000000e+00> : vector<64x8xf32>
    %135 = tpu.matmul %132, %134, %cst_234 {dimension_numbers = #tpu.dot_dimension_numbers<[1], [0], [0], [1], [0, 0, 1, 1], [], []>} : vector<64x4xf32>, vector<4x8xf32>, vector<64x8xf32> -> vector<64x8xf32>
    %136 = arith.addf %129, %135 : vector<64x8xf32>
    %c0_235 = arith.constant 0 : index
    %c0_236 = arith.constant 0 : index
    %137 = vector.load %arg5[%c0_235, %c0_236] : memref<1x8xf32, #tpu.memory_space<vmem>>, vector<1x8xf32>
    %138 = vector.broadcast %137 : vector<1x8xf32> to vector<64x8xf32>
    %139 = arith.addf %136, %138 : vector<64x8xf32>
    %140 = arith.addf %23, %139 : vector<64x8xf32>
    %141 = vector.shape_cast %140 : vector<64x8xf32> to vector<8x8x8xf32>
    %c0_237 = arith.constant 0 : index
    %c0_238 = arith.constant 0 : index
    %c0_239 = arith.constant 0 : index
    %c0_240 = arith.constant 0 : index
    %142 = vector.load %arg6[%c0_237, %c0_238, %c0_239, %c0_240] : memref<1x8x8x8xf32, #tpu.memory_space<vmem>>, vector<1x8x8x8xf32>
    %143 = vector.shape_cast %142 : vector<1x8x8x8xf32> to vector<8x8x8xf32>
    %144 = vector.shape_cast %141 : vector<8x8x8xf32> to vector<1x8x8x8xf32>
    tpu.vector_store %arg6[%c0_237, %c0_238, %c0_239, %c0_240], %144 {strides = array<i32>} : memref<1x8x8x8xf32, #tpu.memory_space<vmem>>, vector<1x8x8x8xf32>,
    return
  }
  func.func @transform_0(%arg0: i32) -> (i32, i32, i32, i32, i32, i32) {
    %c0_i32 = arith.constant 0 : i32
    %c0_i32_0 = arith.constant 0 : i32
    %c0_i32_1 = arith.constant 0 : i32
    %c0_i32_2 = arith.constant 0 : i32
    %c0_i32_3 = arith.constant 0 : i32
    %c0_i32_4 = arith.constant 0 : i32
    return %arg0, %c0_i32, %c0_i32_0, %c0_i32_1, %c0_i32_2, %c0_i32_3 : i32, i32, i32, i32, i32, i32
  }
  func.func @transform_1(%arg0: i32) -> (i32, i32) {
    %c0_i32 = arith.constant 0 : i32
    %c0_i32_0 = arith.constant 0 : i32
    %c0_i32_1 = arith.constant 0 : i32
    return %c0_i32, %c0_i32_0 : i32, i32
  }
  func.func @transform_2(%arg0: i32) -> (i32, i32) {
    %c0_i32 = arith.constant 0 : i32
    %c0_i32_0 = arith.constant 0 : i32
    %c0_i32_1 = arith.constant 0 : i32
    return %c0_i32, %c0_i32_0 : i32, i32
  }
  func.func @transform_3(%arg0: i32) -> (i32, i32, i32, i32, i32, i32) {
    %c0_i32 = arith.constant 0 : i32
    %c0_i32_0 = arith.constant 0 : i32
    %c0_i32_1 = arith.constant 0 : i32
    %c0_i32_2 = arith.constant 0 : i32
    %c0_i32_3 = arith.constant 0 : i32
    %c0_i32_4 = arith.constant 0 : i32
    %c0_i32_5 = arith.constant 0 : i32
    return %c0_i32, %c0_i32_0, %c0_i32_1, %c0_i32_2, %c0_i32_3, %c0_i32_4 : i32, i32, i32, i32, i32, i32
  }
  func.func @transform_4(%arg0: i32) -> (i32, i32) {
    %c0_i32 = arith.constant 0 : i32
    %c0_i32_0 = arith.constant 0 : i32
    %c0_i32_1 = arith.constant 0 : i32
    return %c0_i32, %c0_i32_0 : i32, i32
  }
  func.func @transform_5(%arg0: i32) -> (i32, i32, i32, i32) {
    %c0_i32 = arith.constant 0 : i32
    %c0_i32_0 = arith.constant 0 : i32
    %c0_i32_1 = arith.constant 0 : i32
    %c0_i32_2 = arith.constant 0 : i32
    return %arg0, %c0_i32, %c0_i32_0, %c0_i32_1 : i32, i32, i32, i32
  }
}

</mosaic_0001>

<bundles_post_ra>
// kernel: fadein_concat_forward.1
= control target key start
LH: loop header
LB: loop body
LE: loop exit
PB: predicated region body
PF: predicated region fallthrough
CT: control target
= control target key end

     0   :  { %s2352_s18 = smov 0   ;;  %s3160_s0 = inlined_call_operand.vmem [shape: f32[2,2,2,9,9,4], index: 0, kind: input, shape index: {}]   ;;  %s3161_s1 = inlined_call_operand.vmem [shape: f32[4,8], index: 1, kind: input, shape index: {}]   ;;  %s3162_s2 = inlined_call_operand.vmem [shape: f32[1,8], index: 2, kind: input, shape index: {}]   ;;  %s3163_s3 = inlined_call_operand.vmem [shape: f32[2,2,2,2,4,8], index: 3, kind: input, shape index: {}]   ;;  %s3164_s4 = inlined_call_operand.vmem [shape: f32[1,8], index: 4, kind: input, shape index: {}]   ;;  %s3165_s5 = inlined_call_operand.vmem [shape: f32[2,8,8,8], index: 5, kind: output, shape index: {}]  }
   0x1 LB: > { %s1955_s19 = sadd.s32 4294967295, %s2320_s18   ;;  %p1959_p0 = scmp.ge.s32.totalorder %s2320_s18, 1  ;;  %s2320_s18 = sphi %s2352_s18, %s15_s18  }
   0x2   : > { %p187_p1 = scmp.lt.s32.totalorder %s2320_s18, 3 }
   0x4   : > { %p188_p2 = pnand %p1959_p0, %p187_p1 }
   0x6   : > { %191 = sbr.rel (%p188_p2) target bundleno = 451 (0x1c3), region = 40 }
   0xb   : > { %v433_v0 = vld [vmem:[%s3161_s1] sm:$0xf]  ;;  %vm463_vm0 = vcmask 1043456   ;;  %p215_p3 = scmp.lt.s32.totalorder %s1955_s19, 1  ;;  %v2061_v2 = vld [vmem:[%s3163_s3 + $0x10] sm:$0xf] }
   0xc   : > { %2300 = vmatpush.msk.msra.mxu1 %vm463_vm0, %v433_v0  ;;  %2301 = vmatpush.msk.msra.mxu2 %vm463_vm0, %v433_v0  ;;  %v516_v1 = vld [vmem:[%s3163_s3] sm:$0xf]  ;;  %v2034_v3 = vld [vmem:[%s3163_s3 + $0x4] sm:$0xf]  ;;  %vm378_vm1 = vcmask 1046528   ;;  %vm438_vm2 = vcmask 31744  }
   0xd   : > { %s3195_s19 = smov (!%p215_p3, %s1955_s19), 1  ;;  %2302 = vmatpush.msk.msra.mxu3 %vm463_vm0, %v433_v0  ;;  %2017 = vmatpush.msk.msra.mxu0 %vm463_vm0, %v433_v0  ;;  %vm1891_vm3 = vcmask 64512  }
   0xe   : > { %2044 = vmatpush.msk.msrb.mxu2 %vm463_vm0, %v516_v1  ;;  %2035 = vmatpush.msk.msrb.mxu1 %vm463_vm0, %v2034_v3  ;;  %s2303_s28 = smul.u32 576, %s3195_s19  ;;  %s2299_s14 = sshll.u32 %s3195_s19, 6 }
   0xf   : > { %2062 = vmatpush.msk.msrb.mxu3 %vm463_vm0, %v2061_v2  ;;  %s3096_s17 = scalar_lea.vmem %s3165_s5, %s2299_s14 }
  0x10   : > { %s2385_s6 = scalar_lea.vmem %s3160_s0, %s2303_s28 }
  0x11   : > { %v2388_v4 = vld [vmem:[%s2385_s6 + $0x20] sm:$0xff]  ;;  %v230_v5 = vld [vmem:[%s2385_s6 + $0x28] sm:$0x1]  ;;  %v2392_v6 = vld [vmem:[%s2385_s6 + $0x30] sm:$0xff] }
  0x12   : > { %v232_v7 = vld [vmem:[%s2385_s6 + $0x38] sm:$0x1]  ;;  %v2396_v8 = vld [vmem:[%s2385_s6 + $0xb0] sm:$0xff]  ;;  %v2400_v10 = vld [vmem:[%s2385_s6 + $0xc0] sm:$0xff] }
  0x13   : > { %v1968_v9 = vld [vmem:[%s2385_s6 + $0xb8] sm:$0x1]  ;;  %v1970_v11 = vld [vmem:[%s2385_s6 + $0xc8] sm:$0x1]  ;;  %v266_v12 = vadd.f32 %v2396_v8, %v2388_v4  ;;  %v2406_v14 = vld [vmem:[%s2385_s6 + $0x140] sm:$0xff]  ;;  %v268_v15 = vadd.f32 %v2400_v10, %v2392_v6 }
  0x14   : > { %v267_v13 = vadd.f32 %v1968_v9, %v230_v5  ;;  %v269_v16 = vadd.f32 %v1970_v11, %v232_v7  ;;  %v1986_v17 = vld [vmem:[%s2385_s6 + $0x148] sm:$0x1]  ;;  %v2412_v18 = vld [vmem:[%s2385_s6 + $0x150] sm:$0xff]  ;;  %v1988_v19 = vld [vmem:[%s2385_s6 + $0x158] sm:$0x1] }
  0x15   : > { %v303_v20 = vadd.f32 %v2406_v14, %v266_v12  ;;  %v2417_v22 = vld [vmem:[%s2385_s6 + $0x1d0] sm:$0xff]  ;;  %v2004_v23 = vld [vmem:[%s2385_s6 + $0x1d8] sm:$0x1]  ;;  %v2421_v24 = vld [vmem:[%s2385_s6 + $0x1e0] sm:$0xff]  ;;  %v305_v25 = vadd.f32 %v2412_v18, %v268_v15 }
  0x16   : > { %v304_v21 = vadd.f32 %v1986_v17, %v267_v13  ;;  %v306_v26 = vadd.f32 %v1988_v19, %v269_v16  ;;  %v2006_v27 = vld [vmem:[%s2385_s6 + $0x1e8] sm:$0x1]  ;;  %v2426_v28 = vld [vmem:[%s2385_s6 + $0x40] sm:$0xff]  ;;  %v2433_v32 = vld [vmem:[%s2385_s6 + $0x50] sm:$0xff] }
  0x17   : > { %v234_v29 = vld [vmem:[%s2385_s6 + $0x48] sm:$0x1]  ;;  %v2430_v30 = vadd.f32 %v2417_v22, %v303_v20  ;;  %v236_v33 = vld [vmem:[%s2385_s6 + $0x58] sm:$0x1]  ;;  %v2437_v34 = vld [vmem:[%s2385_s6 + $0xd0] sm:$0xff]  ;;  %v2440_v35 = vadd.f32 %v2421_v24, %v305_v25 }
  0x18   : > { %v341_v31 = vadd.f32 %v2004_v23, %v304_v21  ;;  %v343_v36 = vadd.f32 %v2006_v27, %v306_v26  ;;  %v1972_v37 = vld [vmem:[%s2385_s6 + $0xd8] sm:$0x1]  ;;  %v2444_v38 = vld [vmem:[%s2385_s6 + $0xe0] sm:$0xff]  ;;  %v1974_v39 = vld [vmem:[%s2385_s6 + $0xe8] sm:$0x1]  ;;  %v270_v40 = vadd.f32 %v2437_v34, %v2426_v28 }
  0x19   : > { %v385_v41 = vrot.slane %v2430_v30, 1  ;;  %v271_v43 = vadd.f32 %v1972_v37, %v234_v29  ;;  %v272_v44 = vadd.f32 %v2444_v38, %v2433_v32  ;;  %v2453_v45 = vld [vmem:[%s2385_s6 + $0x160] sm:$0xff]  ;;  %v1990_v46 = vld [vmem:[%s2385_s6 + $0x168] sm:$0x1]  ;;  %v2457_v47 = vld [vmem:[%s2385_s6 + $0x170] sm:$0xff]  ;;  %v356_v48 = vadd.f32 %v2440_v35, %v2430_v30 }
  0x1a   : > { %v386_v42 = vrot.slane %v341_v31, 1  ;;  %v388_v49 = vrot.slane %v2440_v35, 1  ;;  %v389_v50 = vrot.slane %v343_v36, 1  ;;  %v273_v51 = vadd.f32 %v1974_v39, %v236_v33  ;;  %v1992_v52 = vld [vmem:[%s2385_s6 + $0x178] sm:$0x1]  ;;  %v2464_v53 = vld [vmem:[%s2385_s6 + $0x1f0] sm:$0xff] }
  0x1b   : > { %v2467_v54 = vld [vmem:[%s2385_s6 + $0x200] sm:$0xff]  ;;  %v307_v56 = vadd.f32 %v2453_v45, %v270_v40  ;;  %v308_v57 = vadd.f32 %v1990_v46, %v271_v43  ;;  %v309_v58 = vadd.f32 %v2457_v47, %v272_v44  ;;  %v2008_v59 = vld [vmem:[%s2385_s6 + $0x1f8] sm:$0x1]  ;;  %v2010_v60 = vld [vmem:[%s2385_s6 + $0x208] sm:$0x1] }
  0x1c   : > { %v2470_v55 = vsel %vm378_vm1, %v385_v41, %v386_v42  ;;  %v2477_v61 = vld [vmem:[%s2385_s6 + $0x60] sm:$0xff]  ;;  %v390_v62 = vsel %vm378_vm1, %v388_v49, %v389_v50  ;;  %v310_v0 = vadd.f32 %v1992_v52, %v273_v51  ;;  %v238_v1 = vld [vmem:[%s2385_s6 + $0x68] sm:$0x1]  ;;  %v2483_v2 = vld [vmem:[%s2385_s6 + $0x70] sm:$0xff] }
  0x1d   : > { %v413_v63 = vadd.f32 %v2470_v55, %v356_v48  ;;  %v240_v3 = vld [vmem:[%s2385_s6 + $0x78] sm:$0x1]  ;;  %v344_v5 = vadd.f32 %v2464_v53, %v307_v56  ;;  %v345_v7 = vadd.f32 %v2008_v59, %v308_v57  ;;  %v346_v9 = vadd.f32 %v2467_v54, %v309_v58  ;;  %v2489_v11 = vld [vmem:[%s2385_s6 + $0xf0] sm:$0xff]  ;;  %v2493_v13 = vld [vmem:[%s2385_s6 + $0x100] sm:$0xff] }
  0x1e   : > { %v1976_v12 = vld [vmem:[%s2385_s6 + $0xf8] sm:$0x1]  ;;  %v347_v16 = vadd.f32 %v2010_v60, %v310_v0  ;;  %v1978_v17 = vld [vmem:[%s2385_s6 + $0x108] sm:$0x1]  ;;  %v274_v19 = vadd.f32 %v2489_v11, %v2477_v61  ;;  %v2499_v21 = vld [vmem:[%s2385_s6 + $0x180] sm:$0xff]  ;;  %v276_v37 = vadd.f32 %v2493_v13, %v2483_v2 }
  0x1f   : > { %v427_v15 = vadd.f32 %v413_v63, %v390_v62  ;;  %v275_v20 = vadd.f32 %v1976_v12, %v238_v1  ;;  %v1994_v23 = vld [vmem:[%s2385_s6 + $0x188] sm:$0x1]  ;;  %v358_v25 = vadd.f32 %v346_v9, %v344_v5  ;;  %v391_v26 = vrot.slane %v344_v5, 1  ;;  %v2503_v31 = vld [vmem:[%s2385_s6 + $0x190] sm:$0xff]  ;;  %v1996_v33 = vld [vmem:[%s2385_s6 + $0x198] sm:$0x1] }
  0x20   : > { %v392_v27 = vrot.slane %v345_v7, 1  ;;  %v394_v29 = vrot.slane %v346_v9, 1  ;;  %v395_v36 = vrot.slane %v347_v16, 1  ;;  %v277_v39 = vadd.f32 %v1978_v17, %v240_v3  ;;  %v2511_v41 = vld [vmem:[%s2385_s6 + $0x210] sm:$0xff]  ;;  %v2012_v42 = vld [vmem:[%s2385_s6 + $0x218] sm:$0x1] }
  0x21   : > { %2020 = vmatmul.msk.f32.vlgmr.msra.gmra.mxu1 %vm438_vm2, %v427_v15  ;;  %v311_v40 = vadd.f32 %v2499_v21, %v274_v19  ;;  %v2515_v43 = vld [vmem:[%s2385_s6 + $0x220] sm:$0xff]  ;;  %v312_v46 = vadd.f32 %v1994_v23, %v275_v20  ;;  %v2014_v48 = vld [vmem:[%s2385_s6 + $0x228] sm:$0x1]  ;;  %v357_v49 = vadd.f32 %v344_v5, %v2440_v35  ;;  %v313_v57 = vadd.f32 %v2503_v31, %v276_v37  ;;  %v2527_v59 = vld [vmem:[%s2385_s6 + $0x10] sm:$0xff] }
  0x22   : > { %v393_v44 = vsel %vm378_vm1, %v391_v26, %v392_v27  ;;  %v2521_v50 = vld [vmem:[%s2385_s6] sm:$0xff]  ;;  %v226_v51 = vld [vmem:[%s2385_s6 + $0x8] sm:$0x1]  ;;  %v396_v52 = vsel %vm378_vm1, %v394_v29, %v395_v36  ;;  %v314_v58 = vadd.f32 %v1996_v33, %v277_v39  ;;  %v2530_v60 = vld [vmem:[%s2385_s6 + $0x90] sm:$0xff] }
  0x23   : > { %v415_v56 = vadd.f32 %v393_v44, %v358_v25  ;;  %v348_v63 = vadd.f32 %v2511_v41, %v311_v40  ;;  %v349_v0 = vadd.f32 %v2012_v42, %v312_v46  ;;  %v414_v35 = vadd.f32 %v390_v62, %v357_v49  ;;  %v228_v1 = vld [vmem:[%s2385_s6 + $0x18] sm:$0x1]  ;;  %v2536_v5 = vld [vmem:[%s2385_s6 + $0xa0] sm:$0xff]  ;;  %v1966_v17 = vld [vmem:[%s2385_s6 + $0xa8] sm:$0x1] }
  0x24   : > { %v1964_v3 = vld [vmem:[%s2385_s6 + $0x98] sm:$0x1]  ;;  %v262_v7 = vadd.f32 %v2530_v60, %v2521_v50  ;;  %v2541_v15 = vadd.f32 %v2515_v43, %v313_v57  ;;  %v351_v16 = vadd.f32 %v2014_v48, %v314_v58  ;;  %v2545_v62 = vld [vmem:[%s2385_s6 + $0x120] sm:$0xff]  ;;  %v1982_v20 = vld [vmem:[%s2385_s6 + $0x128] sm:$0x1]  ;;  %v264_v40 = vadd.f32 %v2536_v5, %v2527_v59 }
  0x25   : > { %v429_v12 = vadd.f32 %v415_v56, %v396_v52  ;;  %v263_v19 = vadd.f32 %v1964_v3, %v226_v51  ;;  %v397_v23 = vrot.slane %v348_v63, 1  ;;  %v398_v25 = vrot.slane %v349_v0, 1  ;;  %v2549_v29 = vld [vmem:[%s2385_s6 + $0x130] sm:$0xff]  ;;  %v1984_v33 = vld [vmem:[%s2385_s6 + $0x138] sm:$0x1]  ;;  %v2567_v56 = vld [vmem:[%s2385_s6 + $0x80] sm:$0xff] }
  0x26   : > { %v428_v26 = vadd.f32 %v414_v35, %v393_v44  ;;  %v359_v27 = vadd.f32 %v348_v63, %v346_v9  ;;  %v360_v36 = vadd.f32 %v2541_v15, %v348_v63  ;;  %v400_v37 = vrot.slane %v2541_v15, 1  ;;  %v2558_v42 = vld [vmem:[%s2385_s6 + $0x1b0] sm:$0xff]  ;;  %v2000_v9 = vld [vmem:[%s2385_s6 + $0x1b8] sm:$0x1]  ;;  %v2562_v44 = vld [vmem:[%s2385_s6 + $0x1c0] sm:$0xff] }
  0x27   : > { %2022 = vmatmul.msk.f32.vlgmr.msra.gmra.mxu2 %vm438_vm2, %v429_v12  ;;  %v401_v39 = vrot.slane %v351_v16, 1  ;;  %v399_v46 = vsel %vm378_vm1, %v397_v23, %v398_v25  ;;  %v265_v49 = vadd.f32 %v1966_v17, %v228_v1  ;;  %v299_v51 = vadd.f32 %v2545_v62, %v262_v7  ;;  %v242_v57 = vld [vmem:[%s2385_s6 + $0x88] sm:$0x1]  ;;  %v2571_v58 = vld [vmem:[%s2385_s6 + $0x110] sm:$0xff]  ;;  %v2579_v1 = vld [vmem:[%s2385_s6 + $0x1a0] sm:$0xff] }
  0x28   : > { %v416_v48 = vadd.f32 %v396_v52, %v359_v27  ;;  %v417_v0 = vadd.f32 %v399_v46, %v360_v36  ;;  %v300_v35 = vadd.f32 %v1982_v20, %v263_v19  ;;  %v301_v3 = vadd.f32 %v2549_v29, %v264_v40  ;;  %v2002_v12 = vld [vmem:[%s2385_s6 + $0x1c8] sm:$0x1]  ;;  %v1980_v52 = vld [vmem:[%s2385_s6 + $0x118] sm:$0x1]  ;;  %v2586_v27 = vld [vmem:[%s2385_s6 + $0x230] sm:$0xff] }
  0x29   : > { %v402_v63 = vsel %vm378_vm1, %v400_v37, %v401_v39  ;;  %2021 = vmatmul.msk.f32.gmra.mxu1 %vm438_vm2, %v428_v26  ;;  %v302_v16 = vadd.f32 %v1984_v33, %v265_v49  ;;  %v336_v17 = vadd.f32 %v2558_v42, %v299_v51  ;;  %v278_v23 = vadd.f32 %v2571_v58, %v2567_v56  ;;  %v1998_v25 = vld [vmem:[%s2385_s6 + $0x1a8] sm:$0x1]  ;;  %v2079_v19 = vld [vmem:[%s3163_s3 + $0x14] sm:$0xf]  ;;  %v2107_v33 = vld [vmem:[%s3163_s3 + $0xc] sm:$0xf] }
  0x2a   : > { %v430_v7 = vadd.f32 %v416_v48, %v399_v46  ;;  %v431_v20 = vadd.f32 %v417_v0, %v402_v63  ;;  %v337_v26 = vadd.f32 %v2000_v9, %v300_v35  ;;  %v338_v36 = vadd.f32 %v2562_v44, %v301_v3  ;;  %2080 = vmatpush.msk.msrb.mxu0 %vm463_vm0, %v2079_v19  ;;  %v2125_v39 = vld [vmem:[%s3163_s3 + $0x18] sm:$0xf]  ;;  %v2089_v40 = vld [vmem:[%s3163_s3 + $0x8] sm:$0xf] }
  0x2b   : > { %v279_v37 = vadd.f32 %v1980_v52, %v242_v57  ;;  %v339_v46 = vadd.f32 %v2002_v12, %v302_v16  ;;  %v379_v48 = vrot.slane %v336_v17, 1  ;;  %v315_v9 = vadd.f32 %v2579_v1, %v278_v23  ;;  %v2016_v49 = vld [vmem:[%s2385_s6 + $0x238] sm:$0x1]  ;;  %2108 = vmatpush.msk.msra.mxu2 %vm463_vm0, %v2107_v33  ;;  %2090 = vmatpush.msk.msra.mxu1 %vm463_vm0, %v2089_v40 }
  0x2c   : > { %2024 = vmatmul.msk.f32.vlgmr.msra.gmra.mxu3 %vm438_vm2, %v431_v20  ;;  %v354_v51 = vadd.f32 %v338_v36, %v336_v17  ;;  %v380_v57 = vrot.slane %v337_v26, 1  ;;  %v382_v0 = vrot.slane %v338_v36, 1  ;;  %v355_v23 = vadd.f32 %v2430_v30, %v338_v36  ;;  %v2705_v40 = vld [vmem:[%s2385_s6 + $0x11] sm:$0xff] }
  0x2d   : > { %v316_v35 = vadd.f32 %v1998_v25, %v279_v37  ;;  %v383_v3 = vrot.slane %v339_v46, 1  ;;  %v352_v52 = vadd.f32 %v2586_v27, %v315_v9  ;;  %2126 = vmatpush.msk.msra.mxu3 %vm463_vm0, %v2125_v39  ;;  %v2117_v46 = vld [vmem:[%s2385_s6 + $0x121] sm:$0xff] }
  0x2e   : > { %v381_v12 = vsel %vm378_vm1, %v379_v48, %v380_v57  ;;  %v2714_v48 = vld [vmem:[%s2385_s6 + $0xa1] sm:$0xff]  ;;  %v2730_v57 = vld [vmem:[%s2385_s6 + $0xb1] sm:$0xff] }
  0x2f   : > { %2023 = vmatmul.msk.f32.gmra.mxu2 %vm438_vm2, %v430_v7  ;;  %v353_v16 = vadd.f32 %v2016_v49, %v316_v35  ;;  %v384_v19 = vsel %vm378_vm1, %v382_v0, %v383_v3  ;;  %v411_v33 = vadd.f32 %v381_v12, %v354_v51  ;;  %v361_v17 = vadd.f32 %v352_v52, %v2541_v15  ;;  %v2143_v7 = vld [vmem:[%s3163_s3 + $0x1c] sm:$0xf]  ;;  %v2161_v15 = vld [vmem:[%s3163_s3 + $0x20] sm:$0xf]  ;;  %v2135_v49 = vld [vmem:[%s2385_s6 + $0x1b1] sm:$0xff] }
  0x30   : > { %v421_v20 = vrot.slane %v352_v52, 1  ;;  %v412_v36 = vadd.f32 %v384_v19, %v355_v23  ;;  %v2718_v9 = vld [vmem:[%s2385_s6 + $0x21] sm:$0xff]  ;;  %v2726_v51 = vld [vmem:[%s2385_s6 + $0x131] sm:$0xff] }
  0x31   : > { %v422_v26 = vrot.slane %v353_v16, 1  ;;  %2036 = vmatmul.msk.f32.vlgmr.msrb.gmra.mxu1 %vm438_vm2, %v2530_v60  ;;  %v425_v25 = vadd.f32 %v411_v33, %v384_v19  ;;  %v418_v37 = vadd.f32 %v402_v63, %v361_v17  ;;  %v2099_v63 = vld [vmem:[%s2385_s6 + $0x91] sm:$0xff]  ;;  %v2740_v35 = vld [vmem:[%s2385_s6 + $0x1c1] sm:$0xff] }
  0x32   : > { %v426_v60 = vadd.f32 %v412_v36, %v2470_v55  ;;  %v2179_v55 = vld [vmem:[%s3163_s3 + $0x24] sm:$0xf]  ;;  %2162 = vmatpush.msk.msrb.mxu1 %vm463_vm0, %v2161_v15  ;;  %v2735_v0 = vld [vmem:[%s2385_s6 + $0x31] sm:$0xff] }
  0x33   : > { %v423_v39 = vsel %vm378_vm1, %v421_v20, %v422_v26  ;;  %2018 = vmatmul.msk.f32.vlgmr.msra.gmra.mxu0 %vm438_vm2, %v425_v25  ;;  %v2745_v3 = vld [vmem:[%s2385_s6 + $0x141] sm:$0xff]  ;;  %v2760_v16 = vld [vmem:[%s2385_s6 + $0x1d1] sm:$0xff]  ;;  %v2251_v20 = vld [vmem:[%s3163_s3 + $0x2c] sm:$0xf] }
  0x34   : > { %v432_v30 = vadd.f32 %v423_v39, %v418_v37  ;;  %2144 = vmatpush.msk.msra.mxu0 %vm463_vm0, %v2143_v7  ;;  %v2750_v52 = vld [vmem:[%s2385_s6 + $0xc1] sm:$0xff]  ;;  %v2765_v23 = vld [vmem:[%s2385_s6 + $0x151] sm:$0xff] }
  0x35   : > { %v2755_v12 = vld [vmem:[%s2385_s6 + $0x41] sm:$0xff]  ;;  %v2770_v19 = vld [vmem:[%s2385_s6 + $0xd1] sm:$0xff] }
  0x36   : > { %2025 = vmatmul.msk.f32.gmra.mxu3 %vm438_vm2, %v432_v30  ;;  %v2775_v33 = vld [vmem:[%s2385_s6 + $0x51] sm:$0xff]  ;;  %v2780_v17 = vld [vmem:[%s2385_s6 + $0x1e1] sm:$0xff] }
  0x37   : > { %2045 = vmatmul.msk.f32.vlgmr.msrb.gmra.mxu2 %vm438_vm2, %v2521_v50  ;;  %v2197_v50 = vld [vmem:[%s3163_s3 + $0x30] sm:$0xf]  ;;  %v2788_v26 = vld [vmem:[%s2385_s6 + $0x161] sm:$0xff]  ;;  %v2269_v39 = vld [vmem:[%s3163_s3 + $0x38] sm:$0xf] }
  0x38   : > { %2180 = vmatpush.msk.msrb.mxu2 %vm463_vm0, %v2179_v55  ;;  %v2794_v25 = vld [vmem:[%s2385_s6 + $0xe1] sm:$0xff]  ;;  %v2814_v36 = vld [vmem:[%s2385_s6 + $0x1f1] sm:$0xff] }
  0x39   : > { %2037 = vmatmul.msk.f32.gmra.mxu1 %vm438_vm2, %v2536_v5  ;;  %v2801_v7 = vld [vmem:[%s2385_s6 + $0x61] sm:$0xff]  ;;  %v2824_v55 = vld [vmem:[%s2385_s6 + $0xf1] sm:$0xff] }
  0x3a   : > { %v2233_v30 = vld [vmem:[%s3163_s3 + $0x28] sm:$0xf]  ;;  %v2831_v15 = vld [vmem:[%s2385_s6 + $0x71] sm:$0xff] }
  0x3b   : > { %2019 = vmatmul.msk.f32.gmra.mxu0 %vm438_vm2, %v426_v60  ;;  %v2819_v60 = vld [vmem:[%s2385_s6 + $0x171] sm:$0xff] }
  0x3e   : > { %2063 = vmatmul.msk.f32.vlgmr.msrb.gmra.mxu3 %vm438_vm2, %v2545_v62  ;;  %v2215_v62 = vld [vmem:[%s3163_s3 + $0x34] sm:$0xf] }
  0x3f   : > { %2046 = vmatmul.msk.f32.gmra.mxu2 %vm438_vm2, %v2527_v59  ;;  %2198 = vmatpush.msk.msrb.mxu3 %vm463_vm0, %v2197_v50 }
  0x41   : > { %2038 = vmatmul.msk.f32.gmra.mxu1 %vm438_vm2, %v2396_v8 }
  0x43   : > { %2081 = vmatmul.msk.f32.vlgmr.msrb.gmra.mxu0 %vm438_vm2, %v2558_v42  ;;  %v835_v42 = vld [vmem:[%s2385_s6 + $0x1] sm:$0xff] }
  0x44   : > { %2216 = vmatpush.msk.msrb.mxu0 %vm463_vm0, %v2215_v62  ;;  %v2287_v62 = vld [vmem:[%s3163_s3 + $0x3c] sm:$0xf] }
  0x46   : > { %2064 = vmatmul.msk.f32.gmra.mxu3 %vm438_vm2, %v2549_v29 }
  0x47   : > { %2047 = vmatmul.msk.f32.gmra.mxu2 %vm438_vm2, %v2388_v4 }
  0x49   : > { %2039 = vmatmul.msk.f32.gmra.mxu1 %vm438_vm2, %v2400_v10 }
  0x4b   : > { %2082 = vmatmul.msk.f32.gmra.mxu0 %vm438_vm2, %v2562_v44 }
  0x4e   : > { %2065 = vmatmul.msk.f32.gmra.mxu3 %vm438_vm2, %v2406_v14 }
  0x4f   : > { %2048 = vmatmul.msk.f32.gmra.mxu2 %vm438_vm2, %v2392_v6 }
  0x51   : > { %2040 = vmatmul.msk.f32.gmra.mxu1 %vm438_vm2, %v2437_v34 }
  0x53   : > { %2083 = vmatmul.msk.f32.gmra.mxu0 %vm438_vm2, %v2417_v22 }
  0x56   : > { %2066 = vmatmul.msk.f32.gmra.mxu3 %vm438_vm2, %v2412_v18 }
  0x57   : > { %2049 = vmatmul.msk.f32.gmra.mxu2 %vm438_vm2, %v2426_v28 }
  0x59   : > { %2041 = vmatmul.msk.f32.gmra.mxu1 %vm438_vm2, %v2444_v38 }
  0x5b   : > { %2084 = vmatmul.msk.f32.gmra.mxu0 %vm438_vm2, %v2421_v24 }
  0x5e   : > { %2067 = vmatmul.msk.f32.gmra.mxu3 %vm438_vm2, %v2453_v45 }
  0x5f   : > { %2050 = vmatmul.msk.f32.gmra.mxu2 %vm438_vm2, %v2433_v32 }
  0x61   : > { %2042 = vmatmul.msk.f32.gmra.mxu1 %vm438_vm2, %v2489_v11 }
  0x63   : > { %2085 = vmatmul.msk.f32.gmra.mxu0 %vm438_vm2, %v2464_v53 }
  0x66   : > { %2068 = vmatmul.msk.f32.gmra.mxu3 %vm438_vm2, %v2457_v47 }
  0x67   : > { %2051 = vmatmul.msk.f32.gmra.mxu2 %vm438_vm2, %v2477_v61 }
  0x69   : > { %2043 = vmatmul.msk.f32.gmra.mxu1 %vm438_vm2, %v2493_v13 }
  0x6b   : > { %2086 = vmatmul.msk.f32.gmra.mxu0 %vm438_vm2, %v2467_v54 }
  0x6e   : > { %2069 = vmatmul.msk.f32.gmra.mxu3 %vm438_vm2, %v2499_v21 }
  0x6f   : > { %2052 = vmatmul.msk.f32.gmra.mxu2 %vm438_vm2, %v2483_v2 }
  0x71   : > { %2091 = vmatmul.msk.f32.vlgmr.msra.gmra.mxu1 %vm438_vm2, %v835_v42  ;;  %v2840_v42 = vld [vmem:[%s2385_s6 + $0x201] sm:$0xff] }
  0x72   : > { %2234 = vmatpush.msk.msra.mxu1 %vm463_vm0, %v2233_v30 }
  0x73   : > { %2087 = vmatmul.msk.f32.gmra.mxu0 %vm438_vm2, %v2511_v41 }
  0x76   : > { %2070 = vmatmul.msk.f32.gmra.mxu3 %vm438_vm2, %v2503_v31 }
  0x77   : > { %2109 = vmatmul.msk.f32.vlgmr.msra.gmra.mxu2 %vm438_vm2, %v2099_v63 }
  0x78   : > { %2252 = vmatpush.msk.msra.mxu2 %vm463_vm0, %v2251_v20 }
  0x79   : > { %2092 = vmatmul.msk.f32.gmra.mxu1 %vm438_vm2, %v2705_v40 }
  0x7b   : > { %2088 = vmatmul.msk.f32.gmra.mxu0 %vm438_vm2, %v2515_v43 }
  0x7e   : > { %2127 = vmatmul.msk.f32.vlgmr.msra.gmra.mxu3 %vm438_vm2, %v2117_v46  ;;  %v2847_v46 = vld [vmem:[%s2385_s6 + $0x181] sm:$0xff] }
  0x7f   : > { %2110 = vmatmul.msk.f32.gmra.mxu2 %vm438_vm2, %v2714_v48  ;;  %2270 = vmatpush.msk.msra.mxu3 %vm463_vm0, %v2269_v39  ;;  %3173 = vst [vmem:[#allocation5_spill] sm:$0xff] %v2847_v46 }
  0x81   : > { %2093 = vmatmul.msk.f32.gmra.mxu1 %vm438_vm2, %v2718_v9 }
  0x83   : > { %2145 = vmatmul.msk.f32.vlgmr.msra.gmra.mxu0 %vm438_vm2, %v2135_v49  ;;  %v2852_v49 = vld [vmem:[%s2385_s6 + $0x101] sm:$0xff] }
  0x84   : > { %2288 = vmatpush.msk.msra.mxu0 %vm463_vm0, %v2287_v62  ;;  %3174 = vst [vmem:[#allocation6_spill] sm:$0xff] %v2852_v49  ;;  %v2863_v62 = vld [vmem:[%s2385_s6 + $0x211] sm:$0xff] }
  0x85   : > { %3177 = vst [vmem:[#allocation9_spill] sm:$0xff] %v2863_v62 }
  0x86   : > { %2128 = vmatmul.msk.f32.gmra.mxu3 %vm438_vm2, %v2726_v51 }
  0x87   : > { %2111 = vmatmul.msk.f32.gmra.mxu2 %vm438_vm2, %v2730_v57 }
  0x89   : > { %2094 = vmatmul.msk.f32.gmra.mxu1 %vm438_vm2, %v2735_v0 }
  0x8b   : > { %2146 = vmatmul.msk.f32.gmra.mxu0 %vm438_vm2, %v2740_v35 }
  0x8e   : > { %2129 = vmatmul.msk.f32.gmra.mxu3 %vm438_vm2, %v2745_v3 }
  0x8f   : > { %2112 = vmatmul.msk.f32.gmra.mxu2 %vm438_vm2, %v2750_v52 }
  0x91   : > { %2095 = vmatmul.msk.f32.gmra.mxu1 %vm438_vm2, %v2755_v12 }
  0x93   : > { %2147 = vmatmul.msk.f32.gmra.mxu0 %vm438_vm2, %v2760_v16 }
  0x96   : > { %2130 = vmatmul.msk.f32.gmra.mxu3 %vm438_vm2, %v2765_v23 }
  0x97   : > { %2113 = vmatmul.msk.f32.gmra.mxu2 %vm438_vm2, %v2770_v19 }
  0x99   : > { %2096 = vmatmul.msk.f32.gmra.mxu1 %vm438_vm2, %v2775_v33 }
  0x9b   : > { %2148 = vmatmul.msk.f32.gmra.mxu0 %vm438_vm2, %v2780_v17 }
  0x9e   : > { %2131 = vmatmul.msk.f32.gmra.mxu3 %vm438_vm2, %v2788_v26  ;;  %v2798_v37 = vpop.f32.mrf.mxu1 }
  0x9f   : > { %3170 = vst [vmem:[#allocation2_spill] sm:$0xff] %v2798_v37  ;;  %2114 = vmatmul.msk.f32.gmra.mxu2 %vm438_vm2, %v2794_v25 }
  0xa1   : > { %2097 = vmatmul.msk.f32.gmra.mxu1 %vm438_vm2, %v2801_v7 }
  0xa3   : > { %2149 = vmatmul.msk.f32.gmra.mxu0 %vm438_vm2, %v2814_v36 }
  0xa6   : > { %2132 = vmatmul.msk.f32.gmra.mxu3 %vm438_vm2, %v2819_v60  ;;  %v2828_v50 = vpop.f32.mrf.mxu1 }
  0xa7   : > { %3171 = vst [vmem:[#allocation3_spill] sm:$0xff] %v2828_v50  ;;  %2115 = vmatmul.msk.f32.gmra.mxu2 %vm438_vm2, %v2824_v55  ;;  %v2870_v50 = vld [vmem:[%s2385_s6 + $0x191] sm:$0xff] }
  0xa8   : > { %3179 = vst [vmem:[#allocation11_spill] sm:$0xff] %v2870_v50 }
  0xa9   : > { %2098 = vmatmul.msk.f32.gmra.mxu1 %vm438_vm2, %v2831_v15 }
  0xaa   : > { %v2844_v63 = vpop.f32.mrf.mxu2 }
  0xab   : > { %3172 = vst [vmem:[#allocation4_spill] sm:$0xff] %v2844_v63  ;;  %2150 = vmatmul.msk.f32.gmra.mxu0 %vm438_vm2, %v2840_v42 }
  0xae   : > { %2133 = vmatmul.msk.f32.gmra.mxu3 %vm438_vm2, %v2847_v46  ;;  %v571_v20 = vpop.f32.mrf.mxu1 }
  0xaf   : > { %2116 = vmatmul.msk.f32.gmra.mxu2 %vm438_vm2, %v2852_v49  ;;  %v2858_v39 = vpop.f32.mrf.mxu3  ;;  %v2883_v49 = vld [vmem:[%s2385_s6 + $0x221] sm:$0xff] }
  0xb0   : > { %3175 = vst [vmem:[#allocation7_spill] sm:$0xff] %v2858_v39  ;;  %v2860_v30 = vpop.f32.mrf.mxu0 }
  0xb1   : > { %3176 = vst [vmem:[#allocation8_spill] sm:$0xff] %v2860_v30  ;;  %2163 = vmatmul.msk.f32.vlgmr.msrb.gmra.mxu1 %vm438_vm2, %v2527_v59 }
  0xb2   : > { %v2867_v63 = vpop.f32.mrf.mxu2 }
  0xb3   : > { %3178 = vst [vmem:[#allocation10_spill] sm:$0xff] %v2867_v63  ;;  %2151 = vmatmul.msk.f32.gmra.mxu0 %vm438_vm2, %v2863_v62 }
  0xb6   : > { %2134 = vmatmul.msk.f32.gmra.mxu3 %vm438_vm2, %v2870_v50  ;;  %v574_v37 = vpop.f32.mrf.mxu1 }
  0xb7   : > { %2181 = vmatmul.msk.f32.vlgmr.msrb.gmra.mxu2 %vm438_vm2, %v2536_v5 }
  0xb8   : > { %v2880_v30 = vpop.f32.mrf.mxu0 }
  0xb9   : > { %v2878_v39 = vpop.f32.mrf.mxu3  ;;  %3181 = vst [vmem:[#allocation13_spill] sm:$0xff] %v2880_v30  ;;  %2164 = vmatmul.msk.f32.gmra.mxu1 %vm438_vm2, %v2388_v4 }
  0xba   : > { %3180 = vst [vmem:[#allocation12_spill] sm:$0xff] %v2878_v39  ;;  %v639_v59 = vpop.f32.mrf.mxu2 }
  0xbb   : > { %v640_v63 = vadd.f32 %v639_v59, %v571_v20  ;;  %2152 = vmatmul.msk.f32.gmra.mxu0 %vm438_vm2, %v2883_v49 }
  0xbe   : > { %2199 = vmatmul.msk.f32.vlgmr.msrb.gmra.mxu3 %vm438_vm2, %v2549_v29  ;;  %v577_v50 = vpop.f32.mrf.mxu1 }
  0xbf   : > { %2182 = vmatmul.msk.f32.gmra.mxu2 %vm438_vm2, %v2396_v8 }
  0xc0   : > { %v803_v39 = vpop.f32.mrf.mxu0 }
  0xc1   : > { %v717_v5 = vpop.f32.mrf.mxu3  ;;  %2165 = vmatmul.msk.f32.gmra.mxu1 %vm438_vm2, %v2392_v6 }
  0xc2   : > { %v741_v30 = vadd.f32 %v717_v5, %v640_v63  ;;  %v642_v62 = vpop.f32.mrf.mxu2 }
  0xc3   : > { %v643_v4 = vadd.f32 %v642_v62, %v574_v37  ;;  %2217 = vmatmul.msk.f32.vlgmr.msrb.gmra.mxu0 %vm438_vm2, %v2562_v44 }
  0xc4   : > { %v827_v46 = vadd.f32 %v803_v39, %v741_v30 }
  0xc6   : > { %2200 = vmatmul.msk.f32.gmra.mxu3 %vm438_vm2, %v2406_v14  ;;  %v580_v29 = vpop.f32.mrf.mxu1 }
  0xc7   : > { %2183 = vmatmul.msk.f32.gmra.mxu2 %vm438_vm2, %v2400_v10 }
  0xc8   : > { %v806_v20 = vpop.f32.mrf.mxu0 }
  0xc9   : > { %v720_v8 = vpop.f32.mrf.mxu3  ;;  %2166 = vmatmul.msk.f32.gmra.mxu1 %vm438_vm2, %v2426_v28 }
  0xca   : > { %v742_v6 = vadd.f32 %v720_v8, %v643_v4  ;;  %v645_v63 = vpop.f32.mrf.mxu2 }
  0xcb   : > { %v646_v59 = vadd.f32 %v645_v63, %v577_v50  ;;  %2218 = vmatmul.msk.f32.gmra.mxu0 %vm438_vm2, %v2417_v22 }
  0xcc   : > { %v828_v37 = vadd.f32 %v806_v20, %v742_v6 }
  0xce   : > { %2201 = vmatmul.msk.f32.gmra.mxu3 %vm438_vm2, %v2412_v18  ;;  %v583_v14 = vpop.f32.mrf.mxu1 }
  0xcf   : > { %2184 = vmatmul.msk.f32.gmra.mxu2 %vm438_vm2, %v2437_v34 }
  0xd0   : > { %v809_v44 = vpop.f32.mrf.mxu0 }
  0xd1   : > { %v723_v10 = vpop.f32.mrf.mxu3  ;;  %2167 = vmatmul.msk.f32.gmra.mxu1 %vm438_vm2, %v2433_v32 }
  0xd2   : > { %v743_v28 = vadd.f32 %v723_v10, %v646_v59  ;;  %v648_v39 = vpop.f32.mrf.mxu2 }
  0xd3   : > { %v649_v30 = vadd.f32 %v648_v39, %v580_v29  ;;  %2219 = vmatmul.msk.f32.gmra.mxu0 %vm438_vm2, %v2421_v24 }
  0xd4   : > { %v829_v50 = vadd.f32 %v809_v44, %v743_v28 }
  0xd6   : > { %2202 = vmatmul.msk.f32.gmra.mxu3 %vm438_vm2, %v2453_v45  ;;  %v586_v18 = vpop.f32.mrf.mxu1 }
  0xd7   : > { %2185 = vmatmul.msk.f32.gmra.mxu2 %vm438_vm2, %v2444_v38 }
  0xd8   : > { %v812_v34 = vpop.f32.mrf.mxu0 }
  0xd9   : > { %v726_v22 = vpop.f32.mrf.mxu3  ;;  %2168 = vmatmul.msk.f32.gmra.mxu1 %vm438_vm2, %v2477_v61 }
  0xda   : > { %v744_v32 = vadd.f32 %v726_v22, %v649_v30  ;;  %v651_v62 = vpop.f32.mrf.mxu2 }
  0xdb   : > { %v652_v5 = vadd.f32 %v651_v62, %v583_v14  ;;  %2220 = vmatmul.msk.f32.gmra.mxu0 %vm438_vm2, %v2464_v53 }
  0xdc   : > { %v2919_v4 = vadd.f32 %v812_v34, %v744_v32 }
  0xde   : > { %2203 = vmatmul.msk.f32.gmra.mxu3 %vm438_vm2, %v2457_v47  ;;  %v589_v24 = vpop.f32.mrf.mxu1 }
  0xdf   : > { %2186 = vmatmul.msk.f32.gmra.mxu2 %vm438_vm2, %v2489_v11 }
  0xe0   : > { %v815_v45 = vpop.f32.mrf.mxu0 }
  0xe1   : > { %v729_v38 = vpop.f32.mrf.mxu3  ;;  %2169 = vmatmul.msk.f32.gmra.mxu1 %vm438_vm2, %v2483_v2 }
  0xe2   : > { %v745_v61 = vadd.f32 %v729_v38, %v652_v5  ;;  %v654_v29 = vpop.f32.mrf.mxu2 }
  0xe3   : > { %v655_v8 = vadd.f32 %v654_v29, %v586_v18  ;;  %2221 = vmatmul.msk.f32.gmra.mxu0 %vm438_vm2, %v2467_v54 }
  0xe4   : > { %v2929_v20 = vadd.f32 %v815_v45, %v745_v61 }
  0xe6   : > { %2204 = vmatmul.msk.f32.gmra.mxu3 %vm438_vm2, %v2499_v21  ;;  %v592_v47 = vpop.f32.mrf.mxu1 }
  0xe7   : > { %2187 = vmatmul.msk.f32.gmra.mxu2 %vm438_vm2, %v2493_v13 }
  0xe8   : > { %v818_v11 = vpop.f32.mrf.mxu0 }
  0xe9   : > { %v732_v53 = vpop.f32.mrf.mxu3  ;;  %2170 = vmatmul.msk.f32.gmra.mxu1 %vm438_vm2, %v2567_v56 }
  0xea   : > { %v746_v2 = vadd.f32 %v732_v53, %v655_v8  ;;  %v657_v6 = vpop.f32.mrf.mxu2 }
  0xeb   : > { %v658_v63 = vadd.f32 %v657_v6, %v589_v24  ;;  %2222 = vmatmul.msk.f32.gmra.mxu0 %vm438_vm2, %v2511_v41 }
  0xec   : > { %v2939_v59 = vadd.f32 %v818_v11, %v746_v2 }
  0xee   : > { %2205 = vmatmul.msk.f32.gmra.mxu3 %vm438_vm2, %v2503_v31  ;;  %v889_v54 = vpop.f32.mrf.mxu1 }
  0xef   : > { %2188 = vmatmul.msk.f32.gmra.mxu2 %vm438_vm2, %v2571_v58  ;;  %v913_v13 = vadd.f32 %v889_v54, %v827_v46 }
  0xf0   : > { %v821_v14 = vpop.f32.mrf.mxu0 }
  0xf1   : > { %v735_v21 = vpop.f32.mrf.mxu3  ;;  %2235 = vmatmul.msk.f32.vlgmr.msra.gmra.mxu1 %vm438_vm2, %v2705_v40 }
  0xf2   : > { %v747_v56 = vadd.f32 %v735_v21, %v658_v63  ;;  %v660_v10 = vpop.f32.mrf.mxu2  ;;  %v3183_v63 = vld [vmem:[#allocation6_spill] sm:$0xff] }
  0xf3   : > { %v661_v44 = vadd.f32 %v660_v10, %v592_v47  ;;  %2223 = vmatmul.msk.f32.gmra.mxu0 %vm438_vm2, %v2515_v43  ;;  %v2250_v10 = vld [vmem:[%s2385_s6 + $0x111] sm:$0xff] }
  0xf4   : > { %v2949_v28 = vadd.f32 %v821_v14, %v747_v56 }
  0xf6   : > { %2206 = vmatmul.msk.f32.gmra.mxu3 %vm438_vm2, %v2579_v1  ;;  %v892_v31 = vpop.f32.mrf.mxu1 }
  0xf7   : > { %2253 = vmatmul.msk.f32.vlgmr.msra.gmra.mxu2 %vm438_vm2, %v2714_v48  ;;  %v914_v41 = vadd.f32 %v892_v31, %v828_v37 }
  0xf8   : > { %v824_v46 = vpop.f32.mrf.mxu0 }
  0xf9   : > { %v738_v58 = vpop.f32.mrf.mxu3  ;;  %2236 = vmatmul.msk.f32.gmra.mxu1 %vm438_vm2, %v2718_v9 }
  0xfa   : > { %v748_v40 = vadd.f32 %v738_v58, %v661_v44  ;;  %v975_v39 = vpop.f32.mrf.mxu2  ;;  %v3185_v44 = vld [vmem:[#allocation11_spill] sm:$0xff] }
  0xfb   : > { %v999_v30 = vadd.f32 %v975_v39, %v913_v13  ;;  %2224 = vmatmul.msk.f32.gmra.mxu0 %vm438_vm2, %v2586_v27 }
  0xfc   : > { %v2959_v18 = vadd.f32 %v824_v46, %v748_v40  ;;  %v2268_v40 = vld [vmem:[%s2385_s6 + $0x1a1] sm:$0xff] }
  0xfe   : > { %2271 = vmatmul.msk.f32.vlgmr.msra.gmra.mxu3 %vm438_vm2, %v2726_v51  ;;  %v895_v43 = vpop.f32.mrf.mxu1 }
  0xff   : > { %2254 = vmatmul.msk.f32.gmra.mxu2 %vm438_vm2, %v2730_v57  ;;  %v915_v1 = vadd.f32 %v895_v43, %v829_v50 }
 0x100   : > { %v1147_v37 = vpop.f32.mrf.mxu0 }
 0x101   : > { %v1061_v48 = vpop.f32.mrf.mxu3  ;;  %2237 = vmatmul.msk.f32.gmra.mxu1 %vm438_vm2, %v2735_v0 }
 0x102   : > { %v1085_v9 = vadd.f32 %v1061_v48, %v999_v30  ;;  %v978_v22 = vpop.f32.mrf.mxu2  ;;  %v2286_v48 = vld [vmem:[%s2385_s6 + $0x231] sm:$0xff] }
 0x103   : > { %v1000_v34 = vadd.f32 %v978_v22, %v914_v41  ;;  %2289 = vmatmul.msk.f32.vlgmr.msra.gmra.mxu0 %vm438_vm2, %v2740_v35 }
 0x104   : > { %v2969_v32 = vadd.f32 %v1147_v37, %v1085_v9 }
 0x106   : > { %2272 = vmatmul.msk.f32.gmra.mxu3 %vm438_vm2, %v2745_v3  ;;  %v898_v27 = vpop.f32.mrf.mxu1 }
 0x107   : > { %2255 = vmatmul.msk.f32.gmra.mxu2 %vm438_vm2, %v2750_v52  ;;  %v916_v51 = vadd.f32 %v898_v27, %v2919_v4 }
 0x108   : > { %v1150_v50 = vpop.f32.mrf.mxu0 }
 0x109   : > { %v1064_v57 = vpop.f32.mrf.mxu3  ;;  %2238 = vmatmul.msk.f32.gmra.mxu1 %vm438_vm2, %v2755_v12 }
 0x10a   : > { %v1086_v0 = vadd.f32 %v1064_v57, %v1000_v34  ;;  %v981_v62 = vpop.f32.mrf.mxu2 }
 0x10b   : > { %v1001_v5 = vadd.f32 %v981_v62, %v915_v1  ;;  %2290 = vmatmul.msk.f32.gmra.mxu0 %vm438_vm2, %v2760_v16 }
 0x10c   : > { %v2980_v24 = vadd.f32 %v1150_v50, %v1086_v0 }
 0x10e   : > { %2273 = vmatmul.msk.f32.gmra.mxu3 %vm438_vm2, %v2765_v23  ;;  %v901_v35 = vpop.f32.mrf.mxu1 }
 0x10f   : > { %2256 = vmatmul.msk.f32.gmra.mxu2 %vm438_vm2, %v2770_v19  ;;  %v917_v3 = vadd.f32 %v901_v35, %v2929_v20 }
 0x110   : > { %v1153_v4 = vpop.f32.mrf.mxu0 }
 0x111   : > { %v1067_v52 = vpop.f32.mrf.mxu3  ;;  %2239 = vmatmul.msk.f32.gmra.mxu1 %vm438_vm2, %v2775_v33 }
 0x112   : > { %v1087_v12 = vadd.f32 %v1067_v52, %v1001_v5  ;;  %v984_v38 = vpop.f32.mrf.mxu2 }
 0x113   : > { %v1002_v45 = vadd.f32 %v984_v38, %v916_v51  ;;  %2291 = vmatmul.msk.f32.gmra.mxu0 %vm438_vm2, %v2780_v17 }
 0x114   : > { %v2991_v61 = vadd.f32 %v1153_v4, %v1087_v12 }
 0x116   : > { %2274 = vmatmul.msk.f32.gmra.mxu3 %vm438_vm2, %v2788_v26  ;;  %v904_v16 = vpop.f32.mrf.mxu1 }
 0x117   : > { %2257 = vmatmul.msk.f32.gmra.mxu2 %vm438_vm2, %v2794_v25  ;;  %v918_v23 = vadd.f32 %v904_v16, %v2939_v59 }
 0x118   : > { %v1156_v29 = vpop.f32.mrf.mxu0 }
 0x119   : > { %v1070_v19 = vpop.f32.mrf.mxu3  ;;  %2240 = vmatmul.msk.f32.gmra.mxu1 %vm438_vm2, %v2801_v7 }
 0x11a   : > { %v1088_v33 = vadd.f32 %v1070_v19, %v1002_v45  ;;  %v987_v8 = vpop.f32.mrf.mxu2 }
 0x11b   : > { %v1003_v20 = vadd.f32 %v987_v8, %v917_v3  ;;  %2292 = vmatmul.msk.f32.gmra.mxu0 %vm438_vm2, %v2814_v36  ;;  %v3182_v36 = vld [vmem:[#allocation5_spill] sm:$0xff] }
 0x11c   : > { %v3002_v47 = vadd.f32 %v1156_v29, %v1088_v33 }
 0x11e   : > { %2275 = vmatmul.msk.f32.gmra.mxu3 %vm438_vm2, %v2819_v60  ;;  %v907_v17 = vpop.f32.mrf.mxu1 }
 0x11f   : > { %2258 = vmatmul.msk.f32.gmra.mxu2 %vm438_vm2, %v2824_v55  ;;  %v919_v26 = vadd.f32 %v907_v17, %v2949_v28  ;;  %v2232_v55 = vld [vmem:[%s2385_s6 + $0x81] sm:$0xff] }
 0x120   : > { %v1159_v7 = vpop.f32.mrf.mxu0 }
 0x121   : > { %v1073_v25 = vpop.f32.mrf.mxu3  ;;  %2241 = vmatmul.msk.f32.gmra.mxu1 %vm438_vm2, %v2831_v15 }
 0x122   : > { %v1089_v53 = vadd.f32 %v1073_v25, %v1003_v20  ;;  %v990_v11 = vpop.f32.mrf.mxu2 }
 0x123   : > { %v1004_v2 = vadd.f32 %v990_v11, %v918_v23  ;;  %2293 = vmatmul.msk.f32.gmra.mxu0 %vm438_vm2, %v2840_v42  ;;  %v3184_v42 = vld [vmem:[#allocation9_spill] sm:$0xff] }
 0x124   : > { %v3013_v6 = vadd.f32 %v1159_v7, %v1089_v53 }
 0x126   : > { %2276 = vmatmul.msk.f32.gmra.mxu3 %vm438_vm2, %v3182_v36  ;;  %v910_v60 = vpop.f32.mrf.mxu1 }
 0x127   : > { %2259 = vmatmul.msk.f32.gmra.mxu2 %vm438_vm2, %v3183_v63  ;;  %v920_v59 = vadd.f32 %v910_v60, %v2959_v18 }
 0x128   : > { %v1162_v54 = vpop.f32.mrf.mxu0 }
 0x129   : > { %v1076_v15 = vpop.f32.mrf.mxu3  ;;  %2242 = vmatmul.msk.f32.gmra.mxu1 %vm438_vm2, %v2232_v55 }
 0x12a   : > { %v1090_v13 = vadd.f32 %v1076_v15, %v1004_v2  ;;  %v993_v21 = vpop.f32.mrf.mxu2 }
 0x12b   : > { %v1005_v14 = vadd.f32 %v993_v21, %v919_v26  ;;  %2294 = vmatmul.msk.f32.gmra.mxu0 %vm438_vm2, %v3184_v42 }
 0x12c   : > { %v3024_v56 = vadd.f32 %v1162_v54, %v1090_v13 }
 0x12e   : > { %2277 = vmatmul.msk.f32.gmra.mxu3 %vm438_vm2, %v3185_v44  ;;  %v1234_v28 = vpop.f32.mrf.mxu1 }
 0x12f   : > { %2260 = vmatmul.msk.f32.gmra.mxu2 %vm438_vm2, %v2250_v10  ;;  %v1258_v25 = vadd.f32 %v1234_v28, %v2969_v32 }
 0x130   : > { %v1165_v41 = vpop.f32.mrf.mxu0 }
 0x131   : > { %v1079_v31 = vpop.f32.mrf.mxu3 }
 0x132   : > { %v1091_v58 = vadd.f32 %v1079_v31, %v1005_v14  ;;  %v996_v46 = vpop.f32.mrf.mxu2 }
 0x133   : > { %v1006_v39 = vadd.f32 %v996_v46, %v920_v59  ;;  %2295 = vmatmul.msk.f32.gmra.mxu0 %vm438_vm2, %v2883_v49 }
 0x134   : > { %v3033_v30 = vadd.f32 %v1165_v41, %v1091_v58 }
 0x136   : > { %2278 = vmatmul.msk.f32.gmra.mxu3 %vm438_vm2, %v2268_v40  ;;  %v1237_v18 = vpop.f32.mrf.mxu1  ;;  %v3087_v40 = vld [vmem:[%s3162_s2] ss:$0 sm:$0xff] }
 0x137   : > { %v1259_v55 = vadd.f32 %v1237_v18, %v2980_v24  ;;  %v3082_v24 = vld [vmem:[%s3164_s4] ss:$0 sm:$0xff] }
 0x138   : > { %v1168_v1 = vpop.f32.mrf.mxu0 }
 0x139   : > { %v1082_v43 = vpop.f32.mrf.mxu3 }
 0x13a   : > { %v1092_v37 = vadd.f32 %v1082_v43, %v1006_v39  ;;  %v1321_v9 = vpop.f32.mrf.mxu2 }
 0x13b   : > { %2296 = vmatmul.msk.f32.gmra.mxu0 %vm438_vm2, %v2286_v48  ;;  %v1345_v11 = vadd.f32 %v1321_v9, %v1258_v25 }
 0x13c   : > { %v3039_v22 = vadd.f32 %v1168_v1, %v1092_v37 }
 0x13e   : > { %v1240_v34 = vpop.f32.mrf.mxu1 }
 0x13f   : > { %v1260_v10 = vadd.f32 %v1240_v34, %v2991_v61  ;;  %v3186_v61 = vld [vmem:[#allocation8_spill] sm:$0xff] }
 0x140   : > { %v1495_v51 = vpop.f32.mrf.mxu0  ;;  %v485_v43 = vadd.f32 %v3087_v40, %v3186_v61 }
 0x141   : > { %v1408_v27 = vpop.f32.mrf.mxu3 }
 0x142   : > { %v1324_v57 = vpop.f32.mrf.mxu2  ;;  %v1432_v36 = vadd.f32 %v1408_v27, %v1345_v11  ;;  %v3187_v11 = vld [vmem:[#allocation13_spill] sm:$0xff] }
 0x143   : > { %v1346_v54 = vadd.f32 %v1324_v57, %v1259_v55 }
 0x144   : > { %v1519_v15 = vadd.f32 %v1495_v51, %v1432_v36  ;;  %v488_v36 = vadd.f32 %v3087_v40, %v3187_v11 }
 0x146   : > { %v1243_v50 = vpop.f32.mrf.mxu1 }
 0x147   : > { %v1261_v9 = vadd.f32 %v1243_v50, %v3002_v47 }
 0x148   : > { %v1498_v62 = vpop.f32.mrf.mxu0 }
 0x149   : > { %v1411_v0 = vpop.f32.mrf.mxu3 }
 0x14a   : > { %v1327_v49 = vpop.f32.mrf.mxu2  ;;  %v1433_v21 = vadd.f32 %v1411_v0, %v1346_v54 }
 0x14b   : > { %v1347_v41 = vadd.f32 %v1327_v49, %v1260_v10  ;;  %v3188_v10 = vld [vmem:[#allocation2_spill] sm:$0xff] }
 0x14c   : > { %v1520_v31 = vadd.f32 %v1498_v62, %v1433_v21 }
 0x14e   : > { %v3042_v5 = vpop.f32.mrf.mxu1 }
 0x14f   : > { %v1262_v50 = vadd.f32 %v3042_v5, %v3013_v6 }
 0x150   : > { %v1501_v3 = vpop.f32.mrf.mxu0 }
 0x151   : > { %v1414_v35 = vpop.f32.mrf.mxu3 }
 0x152   : > { %v1330_v52 = vpop.f32.mrf.mxu2  ;;  %v1434_v1 = vadd.f32 %v1414_v35, %v1347_v41 }
 0x153   : > { %v1348_v62 = vadd.f32 %v1330_v52, %v1261_v9 }
 0x154   : > { %v1521_v0 = vadd.f32 %v1501_v3, %v1434_v1  ;;  %v3189_v1 = vld [vmem:[#allocation3_spill] sm:$0xff] }
 0x156   : > { %v3044_v4 = vpop.f32.mrf.mxu1 }
 0x158   : > { %v3046_v38 = vpop.f32.mrf.mxu0 }
 0x159   : > { %v1417_v12 = vpop.f32.mrf.mxu3 }
 0x15a   : > { %v3048_v45 = vpop.f32.mrf.mxu2 }
 0x15e   : > { %v3050_v16 = vpop.f32.mrf.mxu1 }
 0x160   : > { %v3054_v19 = vpop.f32.mrf.mxu0 }
 0x161   : > { %v3052_v23 = vpop.f32.mrf.mxu3 }
 0x162   : > { %v3056_v29 = vpop.f32.mrf.mxu2 }
 0x166   : > { %v3058_v33 = vpop.f32.mrf.mxu1 }
 0x168   : > { %v3062_v20 = vpop.f32.mrf.mxu0 }
 0x169   : > { %v3060_v8 = vpop.f32.mrf.mxu3 }
 0x16a   : > { %v3064_v17 = vpop.f32.mrf.mxu2 }
 0x16e   : > { %v1581_v26 = vpop.f32.mrf.mxu1 }
 0x16f   : > { %v1605_v32 = vadd.f32 %v1581_v26, %v1519_v15 }
 0x170   : > { %v3069_v53 = vpop.f32.mrf.mxu0 }
 0x171   : > { %v3067_v7 = vpop.f32.mrf.mxu3 }
 0x172   : > { %v3071_v2 = vpop.f32.mrf.mxu2 }
 0x176   : > { %v1584_v60 = vpop.f32.mrf.mxu1 }
 0x177   : > { %v1606_v39 = vadd.f32 %v1584_v60, %v1520_v31  ;;  %v1435_v60 = vadd.f32 %v1417_v12, %v1348_v62 }
 0x178   : > { %v3076_v59 = vpop.f32.mrf.mxu0 }
 0x179   : > { %v3074_v63 = vpop.f32.mrf.mxu3  ;;  %v1522_v54 = vadd.f32 %v3046_v38, %v1435_v60  ;;  %v1263_v38 = vadd.f32 %v3044_v4, %v3024_v56 }
 0x17a   : > { %v1667_v13 = vpop.f32.mrf.mxu2 }
 0x17b   : > { %v1691_v14 = vadd.f32 %v1667_v13, %v1605_v32  ;;  %v1349_v13 = vadd.f32 %v3048_v45, %v1262_v50 }
 0x17d   : > { %v1436_v6 = vadd.f32 %v3052_v23, %v1349_v13 }
 0x17e   : > { %v1587_v42 = vpop.f32.mrf.mxu1 }
 0x17f   : > { %v1607_v26 = vadd.f32 %v1587_v42, %v1521_v0 }
 0x180   : > { %v1839_v28 = vpop.f32.mrf.mxu0 }
 0x181   : > { %v1753_v44 = vpop.f32.mrf.mxu3 }
 0x182   : > { %v1777_v58 = vadd.f32 %v1753_v44, %v1691_v14  ;;  %v1670_v46 = vpop.f32.mrf.mxu2  ;;  %v491_v44 = vadd.f32 %v3087_v40, %v3188_v10 }
 0x183   : > { %v1692_v37 = vadd.f32 %v1670_v46, %v1606_v39  ;;  %v1350_v46 = vadd.f32 %v3056_v29, %v1263_v38 }
 0x184   : > { %v1863_v18 = vadd.f32 %v1839_v28, %v1777_v58  ;;  %v1523_v58 = vadd.f32 %v3054_v19, %v1436_v6  ;;  %v1264_v19 = vadd.f32 %v3050_v16, %v3033_v30 }
 0x185   : > { %v1437_v56 = vadd.f32 %v3060_v8, %v1350_v46 }
 0x186   : > { %v1875_v48 = vadd.f32 %v3082_v24, %v1863_v18  ;;  %v1590_v27 = vpop.f32.mrf.mxu1 }
 0x187   : > { %v1608_v12 = vadd.f32 %v1590_v27, %v1522_v54  ;;  %v1524_v27 = vadd.f32 %v3062_v20, %v1437_v56  ;;  %v1265_v20 = vadd.f32 %v3058_v33, %v3039_v22 }
 0x188   : > { %v1883_v34 = vadd.f32 %v1875_v48, %v485_v43  ;;  %v1842_v57 = vpop.f32.mrf.mxu0  ;;  %v494_v48 = vadd.f32 %v3087_v40, %v3189_v1 }
 0x189   : > { %v1756_v51 = vpop.f32.mrf.mxu3 }
 0x18a   : > { %1892 = vst.msk [vmem:[%s3096_s17] sm:$0xff] %vm1891_vm3, %v1883_v34  ;;  %v1778_v49 = vadd.f32 %v1756_v51, %v1692_v37  ;;  %v1673_v35 = vpop.f32.mrf.mxu2  ;;  %v1351_v51 = vadd.f32 %v3064_v17, %v1264_v19 }
 0x18b   : > { %v1693_v47 = vadd.f32 %v1673_v35, %v1607_v26 }
 0x18c   : > { %v1864_v25 = vadd.f32 %v1842_v57, %v1778_v49  ;;  %v3190_v49 = vld [vmem:[#allocation4_spill] sm:$0xff]  ;;  %v1438_v26 = vadd.f32 %v3067_v7, %v1351_v51 }
 0x18d   : > { %v497_v35 = vadd.f32 %v3087_v40, %v3190_v49 }
 0x18e   : > { %v1876_v55 = vadd.f32 %v3082_v24, %v1864_v25  ;;  %v1593_v14 = vpop.f32.mrf.mxu1  ;;  %v1525_v60 = vadd.f32 %v3069_v53, %v1438_v26 }
 0x18f   : > { %v1609_v61 = vadd.f32 %v1593_v14, %v1523_v58 }
 0x190   : > { %v1884_v15 = vadd.f32 %v1876_v55, %v488_v36  ;;  %v1845_v52 = vpop.f32.mrf.mxu0  ;;  %v1352_v55 = vadd.f32 %v3071_v2, %v1265_v20 }
 0x191   : > { %v1759_v3 = vpop.f32.mrf.mxu3 }
 0x192   : > { %1893 = vst.msk [vmem:[%s3096_s17 + $0x8] sm:$0xff] %vm1891_vm3, %v1884_v15  ;;  %v1779_v32 = vadd.f32 %v1759_v3, %v1693_v47  ;;  %v1676_v21 = vpop.f32.mrf.mxu2  ;;  %v3191_v3 = vld [vmem:[#allocation10_spill] sm:$0xff]  ;;  %v1439_v54 = vadd.f32 %v3074_v63, %v1352_v55 }
 0x193   : > { %v1694_v28 = vadd.f32 %v1676_v21, %v1608_v12 }
 0x194   : > { %v1865_v42 = vadd.f32 %v1845_v52, %v1779_v32  ;;  %v500_v52 = vadd.f32 %v3087_v40, %v3191_v3  ;;  %v1526_v2 = vadd.f32 %v3076_v59, %v1439_v54 }
 0x196   : > { %v1877_v5 = vadd.f32 %v3082_v24, %v1865_v42  ;;  %v1596_v43 = vpop.f32.mrf.mxu1 }
 0x197   : > { %v1610_v62 = vadd.f32 %v1596_v43, %v1524_v27 }
 0x198   : > { %v1885_v45 = vadd.f32 %v1877_v5, %v491_v44  ;;  %v1848_v41 = vpop.f32.mrf.mxu0  ;;  %v3192_v44 = vld [vmem:[#allocation7_spill] sm:$0xff] }
 0x199   : > { %v1762_v31 = vpop.f32.mrf.mxu3  ;;  %v503_v63 = vadd.f32 %v3087_v40, %v3192_v44 }
 0x19a   : > { %1894 = vst.msk [vmem:[%s3096_s17 + $0x10] sm:$0xff] %vm1891_vm3, %v1885_v45  ;;  %v1780_v39 = vadd.f32 %v1762_v31, %v1694_v28  ;;  %v1679_v18 = vpop.f32.mrf.mxu2 }
 0x19b   : > { %v1695_v37 = vadd.f32 %v1679_v18, %v1609_v61 }
 0x19c   : > { %v1866_v23 = vadd.f32 %v1848_v41, %v1780_v39  ;;  %v3193_v41 = vld [vmem:[#allocation12_spill] sm:$0xff] }
 0x19d   : > { %v506_v58 = vadd.f32 %v3087_v40, %v3193_v41 }
 0x19e   : > { %v1878_v4 = vadd.f32 %v3082_v24, %v1866_v23  ;;  %v1599_v25 = vpop.f32.mrf.mxu1 }
 0x19f   : > { %v1611_v7 = vadd.f32 %v1599_v25, %v1525_v60 }
 0x1a0   : > { %v1886_v29 = vadd.f32 %v1878_v4, %v494_v48  ;;  %v1851_v34 = vpop.f32.mrf.mxu0 }
 0x1a1   : > { %v1765_v9 = vpop.f32.mrf.mxu3 }
 0x1a2   : > { %1895 = vst.msk [vmem:[%s3096_s17 + $0x18] sm:$0xff] %vm1891_vm3, %v1886_v29  ;;  %v1781_v57 = vadd.f32 %v1765_v9, %v1695_v37  ;;  %v1682_v0 = vpop.f32.mrf.mxu2 }
 0x1a3   : > { %v1696_v16 = vadd.f32 %v1682_v0, %v1610_v62 }
 0x1a4   : > { %v1867_v8 = vadd.f32 %v1851_v34, %v1781_v57 }
 0x1a6   : > { %v1879_v30 = vadd.f32 %v3082_v24, %v1867_v8  ;;  %v1602_v53 = vpop.f32.mrf.mxu1 }
 0x1a7   : > { %v1612_v42 = vadd.f32 %v1602_v53, %v1526_v2 }
 0x1a8   : > { %v1887_v17 = vadd.f32 %v1879_v30, %v497_v35  ;;  %v1854_v36 = vpop.f32.mrf.mxu0 }
 0x1a9   : > { %v1768_v11 = vpop.f32.mrf.mxu3 }
 0x1aa   : > { %1896 = vst.msk [vmem:[%s3096_s17 + $0x20] sm:$0xff] %vm1891_vm3, %v1887_v17  ;;  %v1782_v47 = vadd.f32 %v1768_v11, %v1696_v16  ;;  %v1685_v50 = vpop.f32.mrf.mxu2 }
 0x1ab   : > { %v1697_v33 = vadd.f32 %v1685_v50, %v1611_v7 }
 0x1ac   : > { %v1868_v15 = vadd.f32 %v1854_v36, %v1782_v47 }
 0x1ae   : > { %v1880_v22 = vadd.f32 %v3082_v24, %v1868_v15 }
 0x1b0   : > { %v1888_v13 = vadd.f32 %v1880_v22, %v500_v52  ;;  %v1857_v21 = vpop.f32.mrf.mxu0 }
 0x1b1   : > { %v1771_v32 = vpop.f32.mrf.mxu3 }
 0x1b2   : > { %1897 = vst.msk [vmem:[%s3096_s17 + $0x28] sm:$0xff] %vm1891_vm3, %v1888_v13  ;;  %v1783_v14 = vadd.f32 %v1771_v32, %v1697_v33  ;;  %v1688_v12 = vpop.f32.mrf.mxu2 }
 0x1b3   : > { %v1698_v5 = vadd.f32 %v1688_v12, %v1612_v42 }
 0x1b4   : > { %v1869_v10 = vadd.f32 %v1857_v21, %v1783_v14 }
 0x1b6   : > { %v1881_v6 = vadd.f32 %v3082_v24, %v1869_v10 }
 0x1b8   : > { %v1889_v28 = vadd.f32 %v1881_v6, %v503_v63  ;;  %v1860_v45 = vpop.f32.mrf.mxu0 }
 0x1b9   : > { %v1774_v38 = vpop.f32.mrf.mxu3 }
 0x1ba   : > { %1898 = vst.msk [vmem:[%s3096_s17 + $0x30] sm:$0xff] %vm1891_vm3, %v1889_v28  ;;  %v1784_v31 = vadd.f32 %v1774_v38, %v1698_v5 }
 0x1bc   : > { %v1870_v59 = vadd.f32 %v1860_v45, %v1784_v31 }
 0x1be   : > { %v1882_v46 = vadd.f32 %v3082_v24, %v1870_v59 }
 0x1c0   : > { %v1890_v39 = vadd.f32 %v1882_v46, %v506_v58 }
 0x1c2   : > { %1899 = vst.msk [vmem:[%s3096_s17 + $0x38] sm:$0xff] %vm1891_vm3, %v1890_v39 }
 0x1c3 PF: > { %s15_s18 = sadd.s32 1, %s2320_s18  }
 0x1c4   : > { %p12_p4 = scmp.ge.s32.totalorder %s15_s18, 4  }
 0x1c6   :  { %14 = sbr.rel (!%p12_p4) target bundleno = 1 (0x1), region = 92 }

</bundles_post_ra>
